<compile_context>
chip_gen: v7x
topology: tpu7x:2x2x1
jax: 0.10.0
libtpu: 0.0.40
codegen_flags: <defaults>
</compile_context>

<pallas_src>
import functools
import math

import jax
import jax.numpy as jnp
from jax.experimental import pallas as pl
from jax.experimental.pallas import tpu as pltpu


def _layernorm(x, gamma, beta, eps=1e-5):
    # One-pass variance: var = E[x^2] - E[x]^2 (halves the cross-lane reductions).
    mu = jnp.mean(x, axis=-1, keepdims=True)
    var = jnp.maximum(jnp.mean(x * x, axis=-1, keepdims=True) - mu * mu, 0.0)
    return (x - mu) * jax.lax.rsqrt(var + eps) * gamma + beta


def _erf(x):
    # Abramowitz & Stegun 7.1.26 rational approximation, |abs error| <= 1.5e-7.
    # Keeps the kernel on guaranteed-supported elementwise primitives while
    # matching torch.nn.GELU's exact-erf default to ~f32 round-off.
    a1, a2, a3, a4, a5 = 0.254829592, -0.284496736, 1.421413741, -1.453152027, 1.061405429
    pc = 0.3275911
    ax = jnp.abs(x)
    t = 1.0 / (1.0 + pc * ax)
    poly = ((((a5 * t + a4) * t + a3) * t + a2) * t + a1) * t
    y = 1.0 - poly * jnp.exp(-ax * ax)
    return jnp.where(x < 0.0, -y, y)


def _gelu_exact(x):
    return 0.5 * x * (1.0 + _erf(x * (1.0 / math.sqrt(2.0))))


def encoder_block_kernel(
    x_ref,
    ln1_g_ref, ln1_b_ref,
    wqkv_ref, bqkv_ref,
    wo_ref, bo_ref,
    ln2_g_ref, ln2_b_ref,
    w1_ref, b1_ref, w2_ref, b2_ref,
    out_ref,
    qh_ref, kh_ref, vh_ref, ctx_ref,
    *, num_heads, dim_k, dim_v,
):
    f32 = jnp.float32
    bf16 = jnp.bfloat16
    hdk = num_heads * dim_k

    x = x_ref[0].astype(f32)                                            # (N, D)

    # ---------------- multihead attention block: LayerNorm -> MHA ----------------
    xn = _layernorm(x, ln1_g_ref[...], ln1_b_ref[...])

    # Fused QKV projection: one wide MXU matmul (bf16 operands, f32 accumulation).
    qkv = jnp.dot(xn.astype(bf16), wqkv_ref[...],
                  preferred_element_type=f32) + bqkv_ref[...]           # (N, 2*H*dk + H*dv)
    q = qkv[:, :hdk]
    k = qkv[:, hdk:2 * hdk]
    v = qkv[:, 2 * hdk:]

    # Pack heads onto a leading batch axis via VMEM scratch (static slice stores
    # only; avoids lane-splitting reshapes / rank-3 transposes in-kernel).
    for h in range(num_heads):
        qh_ref[h] = q[:, h * dim_k:(h + 1) * dim_k]
        kh_ref[h] = k[:, h * dim_k:(h + 1) * dim_k]
        vh_ref[h] = v[:, h * dim_v:(h + 1) * dim_v]

    scale = 1.0 / math.sqrt(dim_k)
    qh = (qh_ref[...] * scale).astype(bf16)                             # (H, N, dk)
    kh = kh_ref[...].astype(bf16)                                       # (H, N, dk)
    vh = vh_ref[...].astype(bf16)                                       # (H, N, dv)

    # Head-batched attention: single batched QK^T, softmax, single batched P@V.
    s = jnp.einsum("hnd,hmd->hnm", qh, kh, preferred_element_type=f32)  # (H, N, N)
    s = s - jnp.max(s, axis=-1, keepdims=True)
    p = jnp.exp(s)
    denom = jnp.sum(p, axis=-1, keepdims=True)
    p = p * pl.reciprocal(denom, approx=True)                           # softmax (EUP recip)
    # TODO(synk): attention dropout is identity in eval/inference mode.
    ctx = jnp.einsum("hnm,hmd->hnd", p.astype(bf16), vh,
                     preferred_element_type=f32)                        # (H, N, dv)

    # Concatenate heads back to (N, H*dv) through scratch, then ONE output
    # projection matmul (instead of H accumulated (N,dv)@(dv,D) matmuls).
    for h in range(num_heads):
        ctx_ref[:, h * dim_v:(h + 1) * dim_v] = ctx[h]
    attn = jnp.dot(ctx_ref[...].astype(bf16), wo_ref[...],
                   preferred_element_type=f32) + bo_ref[...]            # (N, D)
    h1 = attn + x                                                       # residual 1

    # ---------------- feedforward block: LayerNorm -> Linear -> GELU -> Linear ----------------
    hn = _layernorm(h1, ln2_g_ref[...], ln2_b_ref[...])
    f = jnp.dot(hn.astype(bf16), w1_ref[...], preferred_element_type=f32) + b1_ref[...]
    f = _gelu_exact(f)
    f = jnp.dot(f.astype(bf16), w2_ref[...], preferred_element_type=f32) + b2_ref[...]
    # TODO(synk): feedforward dropout is identity in eval/inference mode.
    out_ref[0] = (f + h1).astype(out_ref.dtype)                         # residual 2


_PARAM_ORDER = [
    "ln1_g", "ln1_b",
    "wqkv", "bqkv",
    "wo", "bo",
    "ln2_g", "ln2_b",
    "w1", "b1", "w2", "b2",
]


def transformer_encoder_block(x, params, *, num_heads, dim_k, dim_v):
    B, N, D = x.shape
    bf16 = jnp.bfloat16
    hdk, hdv = num_heads * dim_k, num_heads * dim_v
    F = params["w1"].shape[1]

    # Fuse Q|K|V weights/biases into a single projection operand; store all MXU
    # weight operands in bf16 at the pallas_call boundary (halves weight DMA).
    fused = {
        "ln1_g": params["ln1_g"], "ln1_b": params["ln1_b"],
        "wqkv": jnp.concatenate(
            [params["wq"], params["wk"], params["wv"]], axis=1).astype(bf16),
        "bqkv": jnp.concatenate(
            [params["bq"], params["bk"], params["bv"]], axis=1),
        "wo": params["wo"].astype(bf16), "bo": params["bo"],
        "ln2_g": params["ln2_g"], "ln2_b": params["ln2_b"],
        "w1": params["w1"].astype(bf16), "b1": params["b1"],
        "w2": params["w2"].astype(bf16), "b2": params["b2"],
    }

    in_specs = [pl.BlockSpec((1, N, D), lambda b: (b, 0, 0))]
    inputs = [x]
    for name in _PARAM_ORDER:
        p = fused[name]
        inputs.append(p)
        # full-array (untiled) blocks for parameters, replicated across the grid
        in_specs.append(pl.BlockSpec(p.shape, lambda b, nd=p.ndim: (0,) * nd))

    kernel = functools.partial(
        encoder_block_kernel, num_heads=num_heads, dim_k=dim_k, dim_v=dim_v
    )

    # Advisory cost estimate for XLA scheduling around the custom call.
    flops = 2 * B * N * (
        D * (2 * hdk + hdv)            # fused QKV projection
        + num_heads * N * dim_k        # QK^T
        + num_heads * N * dim_v        # P@V
        + hdv * D                      # output projection
        + 2 * D * F                    # feedforward
    )
    transcendentals = B * (num_heads * N * N + N * F)   # softmax exp + GELU erf/exp
    bytes_accessed = (
        2 * B * N * D * x.dtype.itemsize
        + sum(int(p.size) * p.dtype.itemsize for p in inputs[1:])
    )

    return pl.pallas_call(
        kernel,
        out_shape=jax.ShapeDtypeStruct((B, N, D), x.dtype),
        grid=(B,),
        in_specs=in_specs,
        out_specs=pl.BlockSpec((1, N, D), lambda b: (b, 0, 0)),
        scratch_shapes=[
            pltpu.VMEM((num_heads, N, dim_k), jnp.float32),   # Q packed per head
            pltpu.VMEM((num_heads, N, dim_k), jnp.float32),   # K packed per head
            pltpu.VMEM((num_heads, N, dim_v), jnp.float32),   # V packed per head
            pltpu.VMEM((N, hdv), jnp.float32),                # concatenated context
        ],
        compiler_params=pltpu.CompilerParams(
            dimension_semantics=("parallel",),
            vmem_limit_bytes=32 * 1024 * 1024,
        ),
        cost_estimate=pl.CostEstimate(
            flops=int(flops),
            transcendentals=int(transcendentals),
            bytes_accessed=int(bytes_accessed),
        ),
    )(*inputs)


def init_params(key, D, H, dk, dv, F):
    ks = jax.random.split(key, 12)
    n = lambda k, shape, s=0.02: (s * jax.random.normal(k, shape)).astype(jnp.float32)
    return {
        # LayerNorm 1
        "ln1_g": jnp.ones((1, D), jnp.float32),
        "ln1_b": jnp.zeros((1, D), jnp.float32),
        # Q / K / V projections (stored as (in, out); equivalent to nn.Linear y = x W^T + b)
        "wq": n(ks[0], (D, H * dk)), "bq": n(ks[1], (1, H * dk), 0.01),
        "wk": n(ks[2], (D, H * dk)), "bk": n(ks[3], (1, H * dk), 0.01),
        "wv": n(ks[4], (D, H * dv)), "bv": n(ks[5], (1, H * dv), 0.01),
        # output projection
        "wo": n(ks[6], (H * dv, D)), "bo": n(ks[7], (1, D), 0.01),
        # LayerNorm 2
        "ln2_g": jnp.ones((1, D), jnp.float32),
        "ln2_b": jnp.zeros((1, D), jnp.float32),
        # feedforward
        "w1": n(ks[8], (D, F)), "b1": n(ks[9], (1, F), 0.01),
        "w2": n(ks[10], (F, D)), "b2": n(ks[11], (1, D), 0.01),
    }


if __name__ == "__main__":
    # small shapes: batch=2, seq=8, patch_embedding_dim=32,
    # num_heads=4, projection_dim_keys=8, projection_dim_values=8, feedforward_projection_dim=64
    B, N, D = 2, 8, 32
    H, dk, dv, F = 4, 8, 8, 64

    key = jax.random.PRNGKey(0)
    kx, kp = jax.random.split(key)
    x = jax.random.normal(kx, (B, N, D), dtype=jnp.float32)
    params = init_params(kp, D, H, dk, dv, F)

    out = transformer_encoder_block(x, params, num_heads=H, dim_k=dk, dim_v=dv)
    out = jax.block_until_ready(out)
    assert out.shape == (B, N, D) and out.dtype == jnp.float32
    print("KERNEL_OK")
</pallas_src>

<mosaic_0001>
module attributes {stable_mosaic.version = 11 : i64} {
  func.func @encoder_block_kernel(%arg0: i32, %arg1: memref<1x8x32xf32, #tpu.memory_space<vmem>>, %arg2: memref<1x32xf32, #tpu.memory_space<vmem>>, %arg3: memref<1x32xf32, #tpu.memory_space<vmem>>, %arg4: memref<32x96xbf16, #tpu.memory_space<vmem>>, %arg5: memref<1x96xf32, #tpu.memory_space<vmem>>, %arg6: memref<32x32xbf16, #tpu.memory_space<vmem>>, %arg7: memref<1x32xf32, #tpu.memory_space<vmem>>, %arg8: memref<1x32xf32, #tpu.memory_space<vmem>>, %arg9: memref<1x32xf32, #tpu.memory_space<vmem>>, %arg10: memref<32x64xbf16, #tpu.memory_space<vmem>>, %arg11: memref<1x64xf32, #tpu.memory_space<vmem>>, %arg12: memref<64x32xbf16, #tpu.memory_space<vmem>>, %arg13: memref<1x32xf32, #tpu.memory_space<vmem>>, %arg14: memref<1x8x32xf32, #tpu.memory_space<vmem>>, %arg15: memref<4x8x8xf32, #tpu.memory_space<vmem>>, %arg16: memref<4x8x8xf32, #tpu.memory_space<vmem>>, %arg17: memref<4x8x8xf32, #tpu.memory_space<vmem>>, %arg18: memref<8x32xf32, #tpu.memory_space<vmem>>) attributes {dimension_semantics = [#tpu.dimension_semantics<parallel>], iteration_bounds = array<i64: 2>, scalar_prefetch = 0 : i64, scratch_operands = 4 : i64, tpu.core_type = #tpu.core_type<tc>, window_params = [{transform_indices = @transform_0, window_bounds = array<i64: 1, 8, 32>}, {pipeline_mode = #tpu.pipeline_mode<synchronous>, transform_indices = @transform_1, window_bounds = array<i64: 1, 32>}, {pipeline_mode = #tpu.pipeline_mode<synchronous>, transform_indices = @transform_2, window_bounds = array<i64: 1, 32>}, {pipeline_mode = #tpu.pipeline_mode<synchronous>, transform_indices = @transform_3, window_bounds = array<i64: 32, 96>}, {pipeline_mode = #tpu.pipeline_mode<synchronous>, transform_indices = @transform_4, window_bounds = array<i64: 1, 96>}, {pipeline_mode = #tpu.pipeline_mode<synchronous>, transform_indices = @transform_5, window_bounds = array<i64: 32, 32>}, {pipeline_mode = #tpu.pipeline_mode<synchronous>, transform_indices = @transform_6, window_bounds = array<i64: 1, 32>}, {pipeline_mode = #tpu.pipeline_mode<synchronous>, transform_indices = @transform_7, window_bounds = array<i64: 1, 32>}, {pipeline_mode = #tpu.pipeline_mode<synchronous>, transform_indices = @transform_8, window_bounds = array<i64: 1, 32>}, {pipeline_mode = #tpu.pipeline_mode<synchronous>, transform_indices = @transform_9, window_bounds = array<i64: 32, 64>}, {pipeline_mode = #tpu.pipeline_mode<synchronous>, transform_indices = @transform_10, window_bounds = array<i64: 1, 64>}, {pipeline_mode = #tpu.pipeline_mode<synchronous>, transform_indices = @transform_11, window_bounds = array<i64: 64, 32>}, {pipeline_mode = #tpu.pipeline_mode<synchronous>, transform_indices = @transform_12, window_bounds = array<i64: 1, 32>}, {transform_indices = @transform_13, window_bounds = array<i64: 1, 8, 32>}]} {
    %c0 = arith.constant 0 : index
    %c0_0 = arith.constant 0 : index
    %c0_1 = arith.constant 0 : index
    %0 = vector.load %arg1[%c0, %c0_0, %c0_1] : memref<1x8x32xf32, #tpu.memory_space<vmem>>, vector<1x8x32xf32>
    %1 = vector.shape_cast %0 : vector<1x8x32xf32> to vector<8x32xf32>
    %c0_2 = arith.constant 0 : index
    %c0_3 = arith.constant 0 : index
    %2 = vector.load %arg2[%c0_2, %c0_3] : memref<1x32xf32, #tpu.memory_space<vmem>>, vector<1x32xf32>
    %c0_4 = arith.constant 0 : index
    %c0_5 = arith.constant 0 : index
    %3 = vector.load %arg3[%c0_4, %c0_5] : memref<1x32xf32, #tpu.memory_space<vmem>>, vector<1x32xf32>
    %cst = arith.constant dense<0.000000e+00> : vector<8xf32>
    %4 = vector.multi_reduction <add>, %1, %cst [1] : vector<8x32xf32> to vector<8xf32>
    %5 = vector.shape_cast %4 : vector<8xf32> to vector<8x1xf32>
    %cst_6 = arith.constant 3.200000e+01 : f32
    %6 = vector.broadcast %cst_6 : f32 to vector<8x1xf32>
    %7 = arith.divf %5, %6 : vector<8x1xf32>
    %8 = arith.mulf %1, %1 : vector<8x32xf32>
    %cst_7 = arith.constant dense<0.000000e+00> : vector<8xf32>
    %9 = vector.multi_reduction <add>, %8, %cst_7 [1] : vector<8x32xf32> to vector<8xf32>
    %10 = vector.shape_cast %9 : vector<8xf32> to vector<8x1xf32>
    %cst_8 = arith.constant 3.200000e+01 : f32
    %11 = vector.broadcast %cst_8 : f32 to vector<8x1xf32>
    %12 = arith.divf %10, %11 : vector<8x1xf32>
    %13 = arith.mulf %7, %7 : vector<8x1xf32>
    %14 = arith.subf %12, %13 : vector<8x1xf32>
    %cst_9 = arith.constant 0.000000e+00 : f32
    %15 = vector.broadcast %cst_9 : f32 to vector<8x1xf32>
    %16 = arith.maximumf %14, %15 : vector<8x1xf32>
    %17 = vector.broadcast %7 : vector<8x1xf32> to vector<8x32xf32>
    %18 = arith.subf %1, %17 : vector<8x32xf32>
    %cst_10 = arith.constant 9.99999974E-6 : f32
    %19 = vector.broadcast %cst_10 : f32 to vector<8x1xf32>
    %20 = arith.addf %16, %19 : vector<8x1xf32>
    %21 = math.rsqrt %20 : vector<8x1xf32>
    %22 = vector.broadcast %21 : vector<8x1xf32> to vector<8x32xf32>
    %23 = arith.mulf %18, %22 : vector<8x32xf32>
    %24 = vector.broadcast %2 : vector<1x32xf32> to vector<8x32xf32>
    %25 = arith.mulf %23, %24 : vector<8x32xf32>
    %26 = vector.broadcast %3 : vector<1x32xf32> to vector<8x32xf32>
    %27 = arith.addf %25, %26 : vector<8x32xf32>
    %28 = arith.truncf %27 : vector<8x32xf32> to vector<8x32xbf16>
    %c0_11 = arith.constant 0 : index
    %c0_12 = arith.constant 0 : index
    %29 = vector.load %arg4[%c0_11, %c0_12] : memref<32x96xbf16, #tpu.memory_space<vmem>>, vector<32x96xbf16>
    %cst_13 = arith.constant dense<0.000000e+00> : vector<8x96xf32>
    %30 = tpu.matmul %28, %29, %cst_13 {dimension_numbers = #tpu.dot_dimension_numbers<[1], [0], [0], [1], [0, 0, 1, 1], [], []>} : vector<8x32xbf16>, vector<32x96xbf16>, vector<8x96xf32> -> vector<8x96xf32>
    %c0_14 = arith.constant 0 : index
    %c0_15 = arith.constant 0 : index
    %31 = vector.load %arg5[%c0_14, %c0_15] : memref<1x96xf32, #tpu.memory_space<vmem>>, vector<1x96xf32>
    %32 = vector.broadcast %31 : vector<1x96xf32> to vector<8x96xf32>
    %33 = arith.addf %30, %32 : vector<8x96xf32>
    %34 = vector.extract_strided_slice %33 {offsets = [0, 0], sizes = [8, 32], strides = [1, 1]} : vector<8x96xf32> to vector<8x32xf32>
    %35 = vector.extract_strided_slice %33 {offsets = [0, 32], sizes = [8, 32], strides = [1, 1]} : vector<8x96xf32> to vector<8x32xf32>
    %36 = vector.extract_strided_slice %33 {offsets = [0, 64], sizes = [8, 32], strides = [1, 1]} : vector<8x96xf32> to vector<8x32xf32>
    %37 = vector.extract_strided_slice %34 {offsets = [0, 0], sizes = [8, 8], strides = [1, 1]} : vector<8x32xf32> to vector<8x8xf32>
    %c0_16 = arith.constant 0 : index
    %c0_17 = arith.constant 0 : index
    %c0_18 = arith.constant 0 : index
    %38 = vector.load %arg15[%c0_16, %c0_17, %c0_18] : memref<4x8x8xf32, #tpu.memory_space<vmem>>, vector<1x8x8xf32>
    %39 = vector.shape_cast %38 : vector<1x8x8xf32> to vector<8x8xf32>
    %40 = vector.shape_cast %37 : vector<8x8xf32> to vector<1x8x8xf32>
    tpu.vector_store %arg15[%c0_16, %c0_17, %c0_18], %40 {strides = array<i32>} : memref<4x8x8xf32, #tpu.memory_space<vmem>>, vector<1x8x8xf32>,
    %41 = vector.extract_strided_slice %35 {offsets = [0, 0], sizes = [8, 8], strides = [1, 1]} : vector<8x32xf32> to vector<8x8xf32>
    %c0_19 = arith.constant 0 : index
    %c0_20 = arith.constant 0 : index
    %c0_21 = arith.constant 0 : index
    %42 = vector.load %arg16[%c0_19, %c0_20, %c0_21] : memref<4x8x8xf32, #tpu.memory_space<vmem>>, vector<1x8x8xf32>
    %43 = vector.shape_cast %42 : vector<1x8x8xf32> to vector<8x8xf32>
    %44 = vector.shape_cast %41 : vector<8x8xf32> to vector<1x8x8xf32>
    tpu.vector_store %arg16[%c0_19, %c0_20, %c0_21], %44 {strides = array<i32>} : memref<4x8x8xf32, #tpu.memory_space<vmem>>, vector<1x8x8xf32>,
    %45 = vector.extract_strided_slice %36 {offsets = [0, 0], sizes = [8, 8], strides = [1, 1]} : vector<8x32xf32> to vector<8x8xf32>
    %c0_22 = arith.constant 0 : index
    %c0_23 = arith.constant 0 : index
    %c0_24 = arith.constant 0 : index
    %46 = vector.load %arg17[%c0_22, %c0_23, %c0_24] : memref<4x8x8xf32, #tpu.memory_space<vmem>>, vector<1x8x8xf32>
    %47 = vector.shape_cast %46 : vector<1x8x8xf32> to vector<8x8xf32>
    %48 = vector.shape_cast %45 : vector<8x8xf32> to vector<1x8x8xf32>
    tpu.vector_store %arg17[%c0_22, %c0_23, %c0_24], %48 {strides = array<i32>} : memref<4x8x8xf32, #tpu.memory_space<vmem>>, vector<1x8x8xf32>,
    %49 = vector.extract_strided_slice %34 {offsets = [0, 8], sizes = [8, 8], strides = [1, 1]} : vector<8x32xf32> to vector<8x8xf32>
    %c1 = arith.constant 1 : index
    %c0_25 = arith.constant 0 : index
    %c0_26 = arith.constant 0 : index
    %50 = vector.load %arg15[%c1, %c0_25, %c0_26] : memref<4x8x8xf32, #tpu.memory_space<vmem>>, vector<1x8x8xf32>
    %51 = vector.shape_cast %50 : vector<1x8x8xf32> to vector<8x8xf32>
    %52 = vector.shape_cast %49 : vector<8x8xf32> to vector<1x8x8xf32>
    tpu.vector_store %arg15[%c1, %c0_25, %c0_26], %52 {strides = array<i32>} : memref<4x8x8xf32, #tpu.memory_space<vmem>>, vector<1x8x8xf32>,
    %53 = vector.extract_strided_slice %35 {offsets = [0, 8], sizes = [8, 8], strides = [1, 1]} : vector<8x32xf32> to vector<8x8xf32>
    %c1_27 = arith.constant 1 : index
    %c0_28 = arith.constant 0 : index
    %c0_29 = arith.constant 0 : index
    %54 = vector.load %arg16[%c1_27, %c0_28, %c0_29] : memref<4x8x8xf32, #tpu.memory_space<vmem>>, vector<1x8x8xf32>
    %55 = vector.shape_cast %54 : vector<1x8x8xf32> to vector<8x8xf32>
    %56 = vector.shape_cast %53 : vector<8x8xf32> to vector<1x8x8xf32>
    tpu.vector_store %arg16[%c1_27, %c0_28, %c0_29], %56 {strides = array<i32>} : memref<4x8x8xf32, #tpu.memory_space<vmem>>, vector<1x8x8xf32>,
    %57 = vector.extract_strided_slice %36 {offsets = [0, 8], sizes = [8, 8], strides = [1, 1]} : vector<8x32xf32> to vector<8x8xf32>
    %c1_30 = arith.constant 1 : index
    %c0_31 = arith.constant 0 : index
    %c0_32 = arith.constant 0 : index
    %58 = vector.load %arg17[%c1_30, %c0_31, %c0_32] : memref<4x8x8xf32, #tpu.memory_space<vmem>>, vector<1x8x8xf32>
    %59 = vector.shape_cast %58 : vector<1x8x8xf32> to vector<8x8xf32>
    %60 = vector.shape_cast %57 : vector<8x8xf32> to vector<1x8x8xf32>
    tpu.vector_store %arg17[%c1_30, %c0_31, %c0_32], %60 {strides = array<i32>} : memref<4x8x8xf32, #tpu.memory_space<vmem>>, vector<1x8x8xf32>,
    %61 = vector.extract_strided_slice %34 {offsets = [0, 16], sizes = [8, 8], strides = [1, 1]} : vector<8x32xf32> to vector<8x8xf32>
    %c2 = arith.constant 2 : index
    %c0_33 = arith.constant 0 : index
    %c0_34 = arith.constant 0 : index
    %62 = vector.load %arg15[%c2, %c0_33, %c0_34] : memref<4x8x8xf32, #tpu.memory_space<vmem>>, vector<1x8x8xf32>
    %63 = vector.shape_cast %62 : vector<1x8x8xf32> to vector<8x8xf32>
    %64 = vector.shape_cast %61 : vector<8x8xf32> to vector<1x8x8xf32>
    tpu.vector_store %arg15[%c2, %c0_33, %c0_34], %64 {strides = array<i32>} : memref<4x8x8xf32, #tpu.memory_space<vmem>>, vector<1x8x8xf32>,
    %65 = vector.extract_strided_slice %35 {offsets = [0, 16], sizes = [8, 8], strides = [1, 1]} : vector<8x32xf32> to vector<8x8xf32>
    %c2_35 = arith.constant 2 : index
    %c0_36 = arith.constant 0 : index
    %c0_37 = arith.constant 0 : index
    %66 = vector.load %arg16[%c2_35, %c0_36, %c0_37] : memref<4x8x8xf32, #tpu.memory_space<vmem>>, vector<1x8x8xf32>
    %67 = vector.shape_cast %66 : vector<1x8x8xf32> to vector<8x8xf32>
    %68 = vector.shape_cast %65 : vector<8x8xf32> to vector<1x8x8xf32>
    tpu.vector_store %arg16[%c2_35, %c0_36, %c0_37], %68 {strides = array<i32>} : memref<4x8x8xf32, #tpu.memory_space<vmem>>, vector<1x8x8xf32>,
    %69 = vector.extract_strided_slice %36 {offsets = [0, 16], sizes = [8, 8], strides = [1, 1]} : vector<8x32xf32> to vector<8x8xf32>
    %c2_38 = arith.constant 2 : index
    %c0_39 = arith.constant 0 : index
    %c0_40 = arith.constant 0 : index
    %70 = vector.load %arg17[%c2_38, %c0_39, %c0_40] : memref<4x8x8xf32, #tpu.memory_space<vmem>>, vector<1x8x8xf32>
    %71 = vector.shape_cast %70 : vector<1x8x8xf32> to vector<8x8xf32>
    %72 = vector.shape_cast %69 : vector<8x8xf32> to vector<1x8x8xf32>
    tpu.vector_store %arg17[%c2_38, %c0_39, %c0_40], %72 {strides = array<i32>} : memref<4x8x8xf32, #tpu.memory_space<vmem>>, vector<1x8x8xf32>,
    %73 = vector.extract_strided_slice %34 {offsets = [0, 24], sizes = [8, 8], strides = [1, 1]} : vector<8x32xf32> to vector<8x8xf32>
    %c3 = arith.constant 3 : index
    %c0_41 = arith.constant 0 : index
    %c0_42 = arith.constant 0 : index
    %74 = vector.load %arg15[%c3, %c0_41, %c0_42] : memref<4x8x8xf32, #tpu.memory_space<vmem>>, vector<1x8x8xf32>
    %75 = vector.shape_cast %74 : vector<1x8x8xf32> to vector<8x8xf32>
    %76 = vector.shape_cast %73 : vector<8x8xf32> to vector<1x8x8xf32>
    tpu.vector_store %arg15[%c3, %c0_41, %c0_42], %76 {strides = array<i32>} : memref<4x8x8xf32, #tpu.memory_space<vmem>>, vector<1x8x8xf32>,
    %77 = vector.extract_strided_slice %35 {offsets = [0, 24], sizes = [8, 8], strides = [1, 1]} : vector<8x32xf32> to vector<8x8xf32>
    %c3_43 = arith.constant 3 : index
    %c0_44 = arith.constant 0 : index
    %c0_45 = arith.constant 0 : index
    %78 = vector.load %arg16[%c3_43, %c0_44, %c0_45] : memref<4x8x8xf32, #tpu.memory_space<vmem>>, vector<1x8x8xf32>
    %79 = vector.shape_cast %78 : vector<1x8x8xf32> to vector<8x8xf32>
    %80 = vector.shape_cast %77 : vector<8x8xf32> to vector<1x8x8xf32>
    tpu.vector_store %arg16[%c3_43, %c0_44, %c0_45], %80 {strides = array<i32>} : memref<4x8x8xf32, #tpu.memory_space<vmem>>, vector<1x8x8xf32>,
    %81 = vector.extract_strided_slice %36 {offsets = [0, 24], sizes = [8, 8], strides = [1, 1]} : vector<8x32xf32> to vector<8x8xf32>
    %c3_46 = arith.constant 3 : index
    %c0_47 = arith.constant 0 : index
    %c0_48 = arith.constant 0 : index
    %82 = vector.load %arg17[%c3_46, %c0_47, %c0_48] : memref<4x8x8xf32, #tpu.memory_space<vmem>>, vector<1x8x8xf32>
    %83 = vector.shape_cast %82 : vector<1x8x8xf32> to vector<8x8xf32>
    %84 = vector.shape_cast %81 : vector<8x8xf32> to vector<1x8x8xf32>
    tpu.vector_store %arg17[%c3_46, %c0_47, %c0_48], %84 {strides = array<i32>} : memref<4x8x8xf32, #tpu.memory_space<vmem>>, vector<1x8x8xf32>,
    %c0_49 = arith.constant 0 : index
    %c0_50 = arith.constant 0 : index
    %c0_51 = arith.constant 0 : index
    %85 = vector.load %arg15[%c0_49, %c0_50, %c0_51] : memref<4x8x8xf32, #tpu.memory_space<vmem>>, vector<4x8x8xf32>
    %cst_52 = arith.constant 0.353553385 : f32
    %86 = vector.broadcast %cst_52 : f32 to vector<4x8x8xf32>
    %87 = arith.mulf %85, %86 : vector<4x8x8xf32>
    %88 = arith.truncf %87 : vector<4x8x8xf32> to vector<4x8x8xbf16>
    %c0_53 = arith.constant 0 : index
    %c0_54 = arith.constant 0 : index
    %c0_55 = arith.constant 0 : index
    %89 = vector.load %arg16[%c0_53, %c0_54, %c0_55] : memref<4x8x8xf32, #tpu.memory_space<vmem>>, vector<4x8x8xf32>
    %90 = arith.truncf %89 : vector<4x8x8xf32> to vector<4x8x8xbf16>
    %c0_56 = arith.constant 0 : index
    %c0_57 = arith.constant 0 : index
    %c0_58 = arith.constant 0 : index
    %91 = vector.load %arg17[%c0_56, %c0_57, %c0_58] : memref<4x8x8xf32, #tpu.memory_space<vmem>>, vector<4x8x8xf32>
    %92 = arith.truncf %91 : vector<4x8x8xf32> to vector<4x8x8xbf16>
    "tpu.trace_start"() <{level = 10 : i32, message = "hnd,hmd->hnm"}> : () -> ()
    %cst_59 = arith.constant dense<0.000000e+00> : vector<4x8x8xf32>
    %93 = tpu.matmul %88, %90, %cst_59 {dimension_numbers = #tpu.dot_dimension_numbers<[2], [2], [1], [1], [0, 0, 0, 1, 1, 1], [0], [0]>} : vector<4x8x8xbf16>, vector<4x8x8xbf16>, vector<4x8x8xf32> -> vector<4x8x8xf32>
    "tpu.trace_stop"() : () -> ()
    %cst_60 = arith.constant dense<0xFF800000> : vector<4x8xf32>
    %94 = vector.multi_reduction <maximumf>, %93, %cst_60 [2] : vector<4x8x8xf32> to vector<4x8xf32>
    %95 = vector.shape_cast %94 : vector<4x8xf32> to vector<4x8x1xf32>
    %96 = vector.broadcast %95 : vector<4x8x1xf32> to vector<4x8x8xf32>
    %97 = arith.subf %93, %96 : vector<4x8x8xf32>
    %98 = math.exp %97 : vector<4x8x8xf32>
    %cst_61 = arith.constant dense<0.000000e+00> : vector<4x8xf32>
    %99 = vector.multi_reduction <add>, %98, %cst_61 [2] : vector<4x8x8xf32> to vector<4x8xf32>
    %100 = vector.shape_cast %99 : vector<4x8xf32> to vector<4x8x1xf32>
    %101 = tpu.reciprocal %100 {approx = true} : vector<4x8x1xf32> -> vector<4x8x1xf32>
    %102 = vector.broadcast %101 : vector<4x8x1xf32> to vector<4x8x8xf32>
    %103 = arith.mulf %98, %102 : vector<4x8x8xf32>
    %104 = arith.truncf %103 : vector<4x8x8xf32> to vector<4x8x8xbf16>
    "tpu.trace_start"() <{level = 10 : i32, message = "hnm,hmd->hnd"}> : () -> ()
    %cst_62 = arith.constant dense<0.000000e+00> : vector<4x8x8xf32>
    %105 = tpu.matmul %104, %92, %cst_62 {dimension_numbers = #tpu.dot_dimension_numbers<[2], [1], [1], [2], [0, 0, 0, 1, 1, 2], [0], [0]>} : vector<4x8x8xbf16>, vector<4x8x8xbf16>, vector<4x8x8xf32> -> vector<4x8x8xf32>
    "tpu.trace_stop"() : () -> ()
    %106 = vector.extract_strided_slice %105 {offsets = [0, 0, 0], sizes = [1, 8, 8], strides = [1, 1, 1]} : vector<4x8x8xf32> to vector<1x8x8xf32>
    %107 = vector.shape_cast %106 : vector<1x8x8xf32> to vector<8x8xf32>
    %c0_63 = arith.constant 0 : index
    %c0_64 = arith.constant 0 : index
    %108 = vector.load %arg18[%c0_63, %c0_64] : memref<8x32xf32, #tpu.memory_space<vmem>>, vector<8x8xf32>
    tpu.vector_store %arg18[%c0_63, %c0_64], %107 {strides = array<i32>} : memref<8x32xf32, #tpu.memory_space<vmem>>, vector<8x8xf32>,
    %109 = vector.extract_strided_slice %105 {offsets = [1, 0, 0], sizes = [1, 8, 8], strides = [1, 1, 1]} : vector<4x8x8xf32> to vector<1x8x8xf32>
    %110 = vector.shape_cast %109 : vector<1x8x8xf32> to vector<8x8xf32>
    %c0_65 = arith.constant 0 : index
    %c8 = arith.constant 8 : index
    %111 = vector.load %arg18[%c0_65, %c8] : memref<8x32xf32, #tpu.memory_space<vmem>>, vector<8x8xf32>
    tpu.vector_store %arg18[%c0_65, %c8], %110 {strides = array<i32>} : memref<8x32xf32, #tpu.memory_space<vmem>>, vector<8x8xf32>,
    %112 = vector.extract_strided_slice %105 {offsets = [2, 0, 0], sizes = [1, 8, 8], strides = [1, 1, 1]} : vector<4x8x8xf32> to vector<1x8x8xf32>
    %113 = vector.shape_cast %112 : vector<1x8x8xf32> to vector<8x8xf32>
    %c0_66 = arith.constant 0 : index
    %c16 = arith.constant 16 : index
    %114 = vector.load %arg18[%c0_66, %c16] : memref<8x32xf32, #tpu.memory_space<vmem>>, vector<8x8xf32>
    tpu.vector_store %arg18[%c0_66, %c16], %113 {strides = array<i32>} : memref<8x32xf32, #tpu.memory_space<vmem>>, vector<8x8xf32>,
    %115 = vector.extract_strided_slice %105 {offsets = [3, 0, 0], sizes = [1, 8, 8], strides = [1, 1, 1]} : vector<4x8x8xf32> to vector<1x8x8xf32>
    %116 = vector.shape_cast %115 : vector<1x8x8xf32> to vector<8x8xf32>
    %c0_67 = arith.constant 0 : index
    %c24 = arith.constant 24 : index
    %117 = vector.load %arg18[%c0_67, %c24] : memref<8x32xf32, #tpu.memory_space<vmem>>, vector<8x8xf32>
    tpu.vector_store %arg18[%c0_67, %c24], %116 {strides = array<i32>} : memref<8x32xf32, #tpu.memory_space<vmem>>, vector<8x8xf32>,
    %c0_68 = arith.constant 0 : index
    %c0_69 = arith.constant 0 : index
    %118 = vector.load %arg18[%c0_68, %c0_69] : memref<8x32xf32, #tpu.memory_space<vmem>>, vector<8x32xf32>
    %119 = arith.truncf %118 : vector<8x32xf32> to vector<8x32xbf16>
    %c0_70 = arith.constant 0 : index
    %c0_71 = arith.constant 0 : index
    %120 = vector.load %arg6[%c0_70, %c0_71] : memref<32x32xbf16, #tpu.memory_space<vmem>>, vector<32x32xbf16>
    %cst_72 = arith.constant dense<0.000000e+00> : vector<8x32xf32>
    %121 = tpu.matmul %119, %120, %cst_72 {dimension_numbers = #tpu.dot_dimension_numbers<[1], [0], [0], [1], [0, 0, 1, 1], [], []>} : vector<8x32xbf16>, vector<32x32xbf16>, vector<8x32xf32> -> vector<8x32xf32>
    %c0_73 = arith.constant 0 : index
    %c0_74 = arith.constant 0 : index
    %122 = vector.load %arg7[%c0_73, %c0_74] : memref<1x32xf32, #tpu.memory_space<vmem>>, vector<1x32xf32>
    %123 = vector.broadcast %122 : vector<1x32xf32> to vector<8x32xf32>
    %124 = arith.addf %121, %123 : vector<8x32xf32>
    %125 = arith.addf %124, %1 : vector<8x32xf32>
    %c0_75 = arith.constant 0 : index
    %c0_76 = arith.constant 0 : index
    %126 = vector.load %arg8[%c0_75, %c0_76] : memref<1x32xf32, #tpu.memory_space<vmem>>, vector<1x32xf32>
    %c0_77 = arith.constant 0 : index
    %c0_78 = arith.constant 0 : index
    %127 = vector.load %arg9[%c0_77, %c0_78] : memref<1x32xf32, #tpu.memory_space<vmem>>, vector<1x32xf32>
    %cst_79 = arith.constant dense<0.000000e+00> : vector<8xf32>
    %128 = vector.multi_reduction <add>, %125, %cst_79 [1] : vector<8x32xf32> to vector<8xf32>
    %129 = vector.shape_cast %128 : vector<8xf32> to vector<8x1xf32>
    %cst_80 = arith.constant 3.200000e+01 : f32
    %130 = vector.broadcast %cst_80 : f32 to vector<8x1xf32>
    %131 = arith.divf %129, %130 : vector<8x1xf32>
    %132 = arith.mulf %125, %125 : vector<8x32xf32>
    %cst_81 = arith.constant dense<0.000000e+00> : vector<8xf32>
    %133 = vector.multi_reduction <add>, %132, %cst_81 [1] : vector<8x32xf32> to vector<8xf32>
    %134 = vector.shape_cast %133 : vector<8xf32> to vector<8x1xf32>
    %cst_82 = arith.constant 3.200000e+01 : f32
    %135 = vector.broadcast %cst_82 : f32 to vector<8x1xf32>
    %136 = arith.divf %134, %135 : vector<8x1xf32>
    %137 = arith.mulf %131, %131 : vector<8x1xf32>
    %138 = arith.subf %136, %137 : vector<8x1xf32>
    %cst_83 = arith.constant 0.000000e+00 : f32
    %139 = vector.broadcast %cst_83 : f32 to vector<8x1xf32>
    %140 = arith.maximumf %138, %139 : vector<8x1xf32>
    %141 = vector.broadcast %131 : vector<8x1xf32> to vector<8x32xf32>
    %142 = arith.subf %125, %141 : vector<8x32xf32>
    %cst_84 = arith.constant 9.99999974E-6 : f32
    %143 = vector.broadcast %cst_84 : f32 to vector<8x1xf32>
    %144 = arith.addf %140, %143 : vector<8x1xf32>
    %145 = math.rsqrt %144 : vector<8x1xf32>
    %146 = vector.broadcast %145 : vector<8x1xf32> to vector<8x32xf32>
    %147 = arith.mulf %142, %146 : vector<8x32xf32>
    %148 = vector.broadcast %126 : vector<1x32xf32> to vector<8x32xf32>
    %149 = arith.mulf %147, %148 : vector<8x32xf32>
    %150 = vector.broadcast %127 : vector<1x32xf32> to vector<8x32xf32>
    %151 = arith.addf %149, %150 : vector<8x32xf32>
    %152 = arith.truncf %151 : vector<8x32xf32> to vector<8x32xbf16>
    %c0_85 = arith.constant 0 : index
    %c0_86 = arith.constant 0 : index
    %153 = vector.load %arg10[%c0_85, %c0_86] : memref<32x64xbf16, #tpu.memory_space<vmem>>, vector<32x64xbf16>
    %cst_87 = arith.constant dense<0.000000e+00> : vector<8x64xf32>
    %154 = tpu.matmul %152, %153, %cst_87 {dimension_numbers = #tpu.dot_dimension_numbers<[1], [0], [0], [1], [0, 0, 1, 1], [], []>} : vector<8x32xbf16>, vector<32x64xbf16>, vector<8x64xf32> -> vector<8x64xf32>
    %c0_88 = arith.constant 0 : index
    %c0_89 = arith.constant 0 : index
    %155 = vector.load %arg11[%c0_88, %c0_89] : memref<1x64xf32, #tpu.memory_space<vmem>>, vector<1x64xf32>
    %156 = vector.broadcast %155 : vector<1x64xf32> to vector<8x64xf32>
    %157 = arith.addf %154, %156 : vector<8x64xf32>
    %cst_90 = arith.constant 5.000000e-01 : f32
    %158 = vector.broadcast %cst_90 : f32 to vector<8x64xf32>
    %159 = arith.mulf %158, %157 : vector<8x64xf32>
    %cst_91 = arith.constant 0.707106769 : f32
    %160 = vector.broadcast %cst_91 : f32 to vector<8x64xf32>
    %161 = arith.mulf %157, %160 : vector<8x64xf32>
    %162 = math.absf %161 : vector<8x64xf32>
    %cst_92 = arith.constant 0.327591091 : f32
    %163 = vector.broadcast %cst_92 : f32 to vector<8x64xf32>
    %164 = arith.mulf %163, %162 : vector<8x64xf32>
    %cst_93 = arith.constant 1.000000e+00 : f32
    %165 = vector.broadcast %cst_93 : f32 to vector<8x64xf32>
    %166 = arith.addf %165, %164 : vector<8x64xf32>
    %cst_94 = arith.constant 1.000000e+00 : f32
    %167 = vector.broadcast %cst_94 : f32 to vector<8x64xf32>
    %168 = arith.divf %167, %166 : vector<8x64xf32>
    %cst_95 = arith.constant 1.06140542 : f32
    %169 = vector.broadcast %cst_95 : f32 to vector<8x64xf32>
    %170 = arith.mulf %169, %168 : vector<8x64xf32>
    %cst_96 = arith.constant -1.45315206 : f32
    %171 = vector.broadcast %cst_96 : f32 to vector<8x64xf32>
    %172 = arith.addf %170, %171 : vector<8x64xf32>
    %173 = arith.mulf %172, %168 : vector<8x64xf32>
    %cst_97 = arith.constant 1.42141378 : f32
    %174 = vector.broadcast %cst_97 : f32 to vector<8x64xf32>
    %175 = arith.addf %173, %174 : vector<8x64xf32>
    %176 = arith.mulf %175, %168 : vector<8x64xf32>
    %cst_98 = arith.constant -0.284496725 : f32
    %177 = vector.broadcast %cst_98 : f32 to vector<8x64xf32>
    %178 = arith.addf %176, %177 : vector<8x64xf32>
    %179 = arith.mulf %178, %168 : vector<8x64xf32>
    %cst_99 = arith.constant 0.254829586 : f32
    %180 = vector.broadcast %cst_99 : f32 to vector<8x64xf32>
    %181 = arith.addf %179, %180 : vector<8x64xf32>
    %182 = arith.mulf %181, %168 : vector<8x64xf32>
    %cst_100 = arith.constant 0.000000e+00 : f32
    %183 = vector.broadcast %cst_100 : f32 to vector<8x64xf32>
    %184 = arith.subf %183, %162 : vector<8x64xf32>
    %185 = arith.mulf %184, %162 : vector<8x64xf32>
    %186 = math.exp %185 : vector<8x64xf32>
    %187 = arith.mulf %182, %186 : vector<8x64xf32>
    %cst_101 = arith.constant 1.000000e+00 : f32
    %188 = vector.broadcast %cst_101 : f32 to vector<8x64xf32>
    %189 = arith.subf %188, %187 : vector<8x64xf32>
    %cst_102 = arith.constant 0.000000e+00 : f32
    %190 = vector.broadcast %cst_102 : f32 to vector<8x64xf32>
    %191 = arith.cmpf olt, %161, %190 : vector<8x64xf32>
    %cst_103 = arith.constant 0.000000e+00 : f32
    %192 = vector.broadcast %cst_103 : f32 to vector<8x64xf32>
    %193 = arith.subf %192, %189 : vector<8x64xf32>
    %194 = arith.select %191, %193, %189 : vector<8x64xi1>, vector<8x64xf32>
    %cst_104 = arith.constant 1.000000e+00 : f32
    %195 = vector.broadcast %cst_104 : f32 to vector<8x64xf32>
    %196 = arith.addf %195, %194 : vector<8x64xf32>
    %197 = arith.mulf %159, %196 : vector<8x64xf32>
    %198 = arith.truncf %197 : vector<8x64xf32> to vector<8x64xbf16>
    %c0_105 = arith.constant 0 : index
    %c0_106 = arith.constant 0 : index
    %199 = vector.load %arg12[%c0_105, %c0_106] : memref<64x32xbf16, #tpu.memory_space<vmem>>, vector<64x32xbf16>
    %cst_107 = arith.constant dense<0.000000e+00> : vector<8x32xf32>
    %200 = tpu.matmul %198, %199, %cst_107 {dimension_numbers = #tpu.dot_dimension_numbers<[1], [0], [0], [1], [0, 0, 1, 1], [], []>} : vector<8x64xbf16>, vector<64x32xbf16>, vector<8x32xf32> -> vector<8x32xf32>
    %c0_108 = arith.constant 0 : index
    %c0_109 = arith.constant 0 : index
    %201 = vector.load %arg13[%c0_108, %c0_109] : memref<1x32xf32, #tpu.memory_space<vmem>>, vector<1x32xf32>
    %202 = vector.broadcast %201 : vector<1x32xf32> to vector<8x32xf32>
    %203 = arith.addf %200, %202 : vector<8x32xf32>
    %204 = arith.addf %203, %125 : vector<8x32xf32>
    %c0_110 = arith.constant 0 : index
    %c0_111 = arith.constant 0 : index
    %c0_112 = arith.constant 0 : index
    %205 = vector.load %arg14[%c0_110, %c0_111, %c0_112] : memref<1x8x32xf32, #tpu.memory_space<vmem>>, vector<1x8x32xf32>
    %206 = vector.shape_cast %205 : vector<1x8x32xf32> to vector<8x32xf32>
    %207 = vector.shape_cast %204 : vector<8x32xf32> to vector<1x8x32xf32>
    tpu.vector_store %arg14[%c0_110, %c0_111, %c0_112], %207 {strides = array<i32>} : memref<1x8x32xf32, #tpu.memory_space<vmem>>, vector<1x8x32xf32>,
    return
  }
  func.func @transform_0(%arg0: i32) -> (i32, i32, i32) {
    %c0_i32 = arith.constant 0 : i32
    %c0_i32_0 = arith.constant 0 : i32
    %c0_i32_1 = arith.constant 0 : i32
    return %arg0, %c0_i32, %c0_i32_0 : i32, i32, i32
  }
  func.func @transform_1(%arg0: i32) -> (i32, i32) {
    %c0_i32 = arith.constant 0 : i32
    %c0_i32_0 = arith.constant 0 : i32
    %c0_i32_1 = arith.constant 0 : i32
    return %c0_i32, %c0_i32_0 : i32, i32
  }
  func.func @transform_2(%arg0: i32) -> (i32, i32) {
    %c0_i32 = arith.constant 0 : i32
    %c0_i32_0 = arith.constant 0 : i32
    %c0_i32_1 = arith.constant 0 : i32
    return %c0_i32, %c0_i32_0 : i32, i32
  }
  func.func @transform_3(%arg0: i32) -> (i32, i32) {
    %c0_i32 = arith.constant 0 : i32
    %c0_i32_0 = arith.constant 0 : i32
    %c0_i32_1 = arith.constant 0 : i32
    return %c0_i32, %c0_i32_0 : i32, i32
  }
  func.func @transform_4(%arg0: i32) -> (i32, i32) {
    %c0_i32 = arith.constant 0 : i32
    %c0_i32_0 = arith.constant 0 : i32
    %c0_i32_1 = arith.constant 0 : i32
    return %c0_i32, %c0_i32_0 : i32, i32
  }
  func.func @transform_5(%arg0: i32) -> (i32, i32) {
    %c0_i32 = arith.constant 0 : i32
    %c0_i32_0 = arith.constant 0 : i32
    %c0_i32_1 = arith.constant 0 : i32
    return %c0_i32, %c0_i32_0 : i32, i32
  }
  func.func @transform_6(%arg0: i32) -> (i32, i32) {
    %c0_i32 = arith.constant 0 : i32
    %c0_i32_0 = arith.constant 0 : i32
    %c0_i32_1 = arith.constant 0 : i32
    return %c0_i32, %c0_i32_0 : i32, i32
  }
  func.func @transform_7(%arg0: i32) -> (i32, i32) {
    %c0_i32 = arith.constant 0 : i32
    %c0_i32_0 = arith.constant 0 : i32
    %c0_i32_1 = arith.constant 0 : i32
    return %c0_i32, %c0_i32_0 : i32, i32
  }
  func.func @transform_8(%arg0: i32) -> (i32, i32) {
    %c0_i32 = arith.constant 0 : i32
    %c0_i32_0 = arith.constant 0 : i32
    %c0_i32_1 = arith.constant 0 : i32
    return %c0_i32, %c0_i32_0 : i32, i32
  }
  func.func @transform_9(%arg0: i32) -> (i32, i32) {
    %c0_i32 = arith.constant 0 : i32
    %c0_i32_0 = arith.constant 0 : i32
    %c0_i32_1 = arith.constant 0 : i32
    return %c0_i32, %c0_i32_0 : i32, i32
  }
  func.func @transform_10(%arg0: i32) -> (i32, i32) {
    %c0_i32 = arith.constant 0 : i32
    %c0_i32_0 = arith.constant 0 : i32
    %c0_i32_1 = arith.constant 0 : i32
    return %c0_i32, %c0_i32_0 : i32, i32
  }
  func.func @transform_11(%arg0: i32) -> (i32, i32) {
    %c0_i32 = arith.constant 0 : i32
    %c0_i32_0 = arith.constant 0 : i32
    %c0_i32_1 = arith.constant 0 : i32
    return %c0_i32, %c0_i32_0 : i32, i32
  }
  func.func @transform_12(%arg0: i32) -> (i32, i32) {
    %c0_i32 = arith.constant 0 : i32
    %c0_i32_0 = arith.constant 0 : i32
    %c0_i32_1 = arith.constant 0 : i32
    return %c0_i32, %c0_i32_0 : i32, i32
  }
  func.func @transform_13(%arg0: i32) -> (i32, i32, i32) {
    %c0_i32 = arith.constant 0 : i32
    %c0_i32_0 = arith.constant 0 : i32
    %c0_i32_1 = arith.constant 0 : i32
    return %arg0, %c0_i32, %c0_i32_0 : i32, i32, i32
  }
}

</mosaic_0001>

<bundles_post_ra>
// kernel: tpu_custom_call.1
= control target key start
LH: loop header
LB: loop body
LE: loop exit
PB: predicated region body
PF: predicated region fallthrough
CT: control target
= control target key end

     0   :  { %s2454_s0 = inlined_call_operand.vmem [shape: f32[2,8,32], index: 0, kind: input, shape index: {}]   ;;  %s2455_s1 = inlined_call_operand.vmem [shape: f32[1,32], index: 1, kind: input, shape index: {}]   ;;  %s2456_s2 = inlined_call_operand.vmem [shape: f32[1,32], index: 2, kind: input, shape index: {}]   ;;  %s2457_s3 = inlined_call_operand.vmem [shape: bf16[32,96], index: 3, kind: input, shape index: {}]   ;;  %s2458_s4 = inlined_call_operand.hbm [shape: f32[1,96], index: 4, kind: input, shape index: {}]   ;;  %s2459_s5 = inlined_call_operand.vmem [shape: bf16[32,32], index: 5, kind: input, shape index: {}]   ;;  %s2460_s6 = inlined_call_operand.hbm [shape: f32[1,32], index: 6, kind: input, shape index: {}]   ;;  %s2461_s7 = inlined_call_operand.hbm [shape: f32[1,32], index: 7, kind: input, shape index: {}]   ;;  %s2462_s8 = inlined_call_operand.hbm [shape: f32[1,32], index: 8, kind: input, shape index: {}]   ;;  %s2463_s9 = inlined_call_operand.vmem [shape: bf16[32,64], index: 9, kind: input, shape index: {}]   ;;  %s2464_s10 = inlined_call_operand.vmem [shape: f32[1,64], index: 10, kind: input, shape index: {}]   ;;  %s2465_s11 = inlined_call_operand.vmem [shape: bf16[64,32], index: 11, kind: input, shape index: {}]   ;;  %s2466_s12 = inlined_call_operand.vmem [shape: f32[1,32], index: 12, kind: input, shape index: {}]   ;;  %s2467_s13 = inlined_call_operand.hbm [shape: f32[2,8,32], index: 13, kind: output, shape index: {}]  }
   0x1   :  { %2478 = sst [smem:[#allocation25_spill]] %s2467_s13 }
   0x2   :  { %18 = vsyncpa [#allocation7], 0 }
   0x3   :  { %19 = vsyncpa [#allocation10], 0 }
   0x4   :  { %20 = vsyncpa [#allocation13], 0 }
   0x5   :  { %21 = vsyncpa [#allocation8], 0 }
   0x6   :  { %23 = vsyncpa [#allocation8 + $0x1], 0  ;;  %s2076_s25 = smov 0   ;;  %s2078_s26 = smov 0  }
   0x7   :  { %s2080_s27 = smov 0   ;;  %s2082_s28 = smov 0  }
   0x8 LB: > { %2479 = sst [smem:[#allocation19_spill]] %s1971_s25  ;;  %s2097_s29 = sadd.s32 4294967295, %s1983_s28   ;;  %s1983_s28 = sphi %s2082_s28, %s2503_s28   ;;  %s1979_s27 = sphi %s2080_s27, %s2505_s27   ;;  %s1975_s26 = sphi %s2078_s26, %s2507_s26   ;;  %s1971_s25 = sphi %s2076_s25, %s2506_s25  }
   0x9   : > { %2480 = sst [smem:[#allocation20_spill]] %s1979_s27  ;;  %s1505_s30 = sadd.s32 4294967294, %s1983_s28  }
   0xa   : > { %2481 = sst [smem:[#allocation21_spill]] %s1983_s28  ;;  %s2101_s14 = sadd.s32 1, %s1983_s28  }
   0xb   : > { %2482 = sst [smem:[#allocation22_spill]] %s2101_s14  ;;  %s314_s15 = sadd.s32 1, %s1979_s27 }
   0xc   : > { %s311_s16 = ssub.s32 %s1983_s28, %s2101_s14  ;;  %p324_p0 = scmp.ne.s32.totalorder %s1979_s27, %s1975_s26 }
   0xd   : > { %p312_p1 = scmp.eq.s32.totalorder %s311_s16, 0  ;;  %p325_p2 = scmp.eq.s32.totalorder %s2097_s29, 1 }
   0xe   : > { %p330_p3 = scmp.ne.s32.totalorder %s1975_s26, %s1971_s25  ;;  %p331_p4 = scmp.eq.s32.totalorder %s1505_s30, 1 }
   0xf   : > { %s2112_s17 = scalar_select %p312_p1, %s1979_s27, %s314_s15  }
  0x10   : > { %p2114_p5 = por %p325_p2, %p324_p0  ;;  %p2118_p6 = por %p331_p4, %p330_p3 }
  0x11   : > { %2483 = sst [smem:[#allocation23_spill]] %s2112_s17  ;;  %p1506_p7 = scmp.ge.s32.totalorder %s1983_s28, 1 }
  0x12   : > { %s2484_s18 = scalar_select %p2114_p5, 1, 0 }
  0x13   : > { %s2485_s19 = scalar_select %p2118_p6, 1, 0 }
  0x14   : > { %p338_p8 = scmp.lt.s32.totalorder %s1983_s28, 3  ;;  %p2473_p9 = scmp.eq.s32.totalorder %s2097_s29, 0 }
  0x15   : > { %2486 = sst [smem:[#allocation24_spill]] %s2485_s19  ;;  %s1985_s21 = smov [#allocation9]  }
  0x16   : > { %p2125_p10 = pnand %p1506_p7, %p338_p8  ;;  %s374_s22 = sshll.u32 %s1985_s21, 4  ;;  %s375_s22 = int_to_ptr.vmem [resolvable:$true] %s374_s22 }
  0x17   : > { %s1986_s23 = smov [#allocation6]   ;;  %s1987_s15 = smov [#allocation11]  }
  0x18   : > { %s2487_s20 = scalar_select %p2125_p10, 1, 0 }
  0x19   : > { %p1685_p11 = pneg %p2125_p10  ;;  %s360_s24 = sshll.u32 %s1986_s23, 4  ;;  %s2137_s24 = int_to_ptr.vmem [resolvable:$true] %s360_s24 }
  0x1a   : > { %s385_s16 = sshll.u32 %s1987_s15, 4  ;;  %s1797_s21 = scalar_lea.hbm %s2460_s6, 16  ;;  %s2139_s16 = int_to_ptr.vmem [resolvable:$true] %s385_s16 }
  0x1b   : > { %p2133_p12 = pnand %p2473_p9, %p1685_p11  ;;  %p1798_p13 = scmp.ne.s32.totalorder %s2460_s6, %s1797_s21 }
  0x1c   : > { %p1804_p3 = scmp.lt.u32.totalorder %s1797_s21, %s2460_s6 }
  0x1d   : > { %p2149_p0 = pneg %p2133_p12 }
  0x1f   : > { %p1800_p1 = pnand %p2149_p0, %p1798_p13 }
  0x21   : > { %p1801_p2 = pneg %p1800_p1 }
  0x23   : > { %p1806_p4 = pnand %p1804_p3, %p1801_p2 }
  0x25   : > { %1809 = shalt.err (!%p1806_p4)
}
  0x26   : > { %s1810_s27 = scalar_lea.vmem %s375_s22, 16  ;;  %s1817_s14 = scalar_lea.vmem %s375_s22, 32 }
  0x27   : > { %p1811_p7 = scmp.ne.s32.totalorder %s375_s22, %s1810_s27  ;;  %p1818_p9 = scmp.lt.s32.totalorder %s375_s22, %s375_s22 }
  0x28   : > { %p1819_p6 = scmp.lt.s32.totalorder %s1817_s14, %s1810_s27 }
  0x29   : > { %p1813_p8 = pnand %p1811_p7, %p2149_p0 }
  0x2a   : > { %p1820_p5 = por %p1819_p6, %p1818_p9 }
  0x2b   : > { %p1814_p11 = pneg %p1813_p8 }
  0x2d   : > { %p1821_p10 = pnand %p1820_p5, %p1814_p11 }
  0x2f   : > { %1824 = shalt.err (!%p1821_p10)
}
  0x30   : > { %1691 = dma.hbm_to_vmem [thread:$0]  (!%p2133_p12), %s2460_s6, 16, %s375_s22, [#allocation10]  }
  0x31   : > { %s1825_s15 = scalar_lea.hbm %s2458_s4, 16 }
  0x32   : > { %p1826_p13 = scmp.ne.s32.totalorder %s2458_s4, %s1825_s15  ;;  %p1832_p5 = scmp.lt.u32.totalorder %s1825_s15, %s2458_s4 }
  0x34   : > { %p1828_p1 = pnand %p1826_p13, %p2149_p0 }
  0x36   : > { %p1829_p6 = pneg %p1828_p1 }
  0x38   : > { %p1834_p9 = pnand %p1832_p5, %p1829_p6 }
  0x3a   : > { %1837 = shalt.err (!%p1834_p9)
}
  0x3b   : > { %s1838_s22 = scalar_lea.vmem %s2137_s24, 16  ;;  %s1845_s13 = scalar_lea.vmem %s2137_s24, 32 }
  0x3c   : > { %p1839_p10 = scmp.ne.s32.totalorder %s2137_s24, %s1838_s22  ;;  %p1846_p4 = scmp.lt.s32.totalorder %s2137_s24, %s2137_s24 }
  0x3d   : > { %p1847_p7 = scmp.lt.s32.totalorder %s1845_s13, %s1838_s22 }
  0x3e   : > { %p1841_p2 = pnand %p1839_p10, %p2149_p0 }
  0x3f   : > { %p1848_p8 = por %p1847_p7, %p1846_p4 }
  0x40   : > { %p1842_p3 = pneg %p1841_p2 }
  0x42   : > { %p1849_p11 = pnand %p1848_p8, %p1842_p3 }
  0x44   : > { %1852 = shalt.err (!%p1849_p11)
}
  0x45   : > { %1688 = dma.hbm_to_vmem [thread:$0]  (!%p2133_p12), %s2458_s4, 16, %s2137_s24, [#allocation7]  }
  0x46   : > { %s1853_s21 = scalar_lea.hbm %s2461_s7, 16 }
  0x47   : > { %p1854_p13 = scmp.ne.s32.totalorder %s2461_s7, %s1853_s21  ;;  %p1860_p5 = scmp.lt.u32.totalorder %s1853_s21, %s2461_s7 }
  0x49   : > { %p1856_p1 = pnand %p1854_p13, %p2149_p0 }
  0x4b   : > { %p1857_p6 = pneg %p1856_p1 }
  0x4d   : > { %p1862_p9 = pnand %p1860_p5, %p1857_p6 }
  0x4f   : > { %1865 = shalt.err (!%p1862_p9)
}
  0x50   : > { %s1866_s24 = scalar_lea.vmem %s2139_s16, 16  ;;  %s1873_s13 = scalar_lea.vmem %s2139_s16, 32 }
  0x51   : > { %p1867_p10 = scmp.ne.s32.totalorder %s2139_s16, %s1866_s24  ;;  %p1874_p4 = scmp.lt.s32.totalorder %s2139_s16, %s2139_s16 }
  0x52   : > { %p1875_p7 = scmp.lt.s32.totalorder %s1873_s13, %s1866_s24 }
  0x53   : > { %p1869_p2 = pnand %p1867_p10, %p2149_p0 }
  0x54   : > { %p1876_p8 = por %p1875_p7, %p1874_p4 }
  0x55   : > { %p1870_p3 = pneg %p1869_p2 }
  0x57   : > { %p1877_p11 = pnand %p1876_p8, %p1870_p3 }
  0x59   : > { %1880 = shalt.err (!%p1877_p11)
}
  0x5a   : > { %1694 = dma.hbm_to_vmem [thread:$0]  (!%p2133_p12), %s2461_s7, 16, %s2139_s16, [#allocation10]  }
  0x5b   : > { %s1988_s19 = smov [#allocation12]   ;;  %s1881_s27 = scalar_lea.hbm %s2462_s8, 16 }
  0x5c   : > { %s396_s25 = sshll.u32 %s1988_s19, 4  ;;  %p1882_p13 = scmp.ne.s32.totalorder %s2462_s8, %s1881_s27  ;;  %s397_s25 = int_to_ptr.vmem [resolvable:$true] %s396_s25 }
  0x5d   : > { %p1888_p5 = scmp.lt.u32.totalorder %s1881_s27, %s2462_s8 }
  0x5e   : > { %p1884_p1 = pnand %p1882_p13, %p2149_p0 }
  0x60   : > { %p1885_p6 = pneg %p1884_p1 }
  0x62   : > { %p1890_p9 = pnand %p1888_p5, %p1885_p6 }
  0x64   : > { %1893 = shalt.err (!%p1890_p9)
}
  0x65   : > { %s1894_s16 = scalar_lea.vmem %s397_s25, 16  ;;  %s1901_s28 = scalar_lea.vmem %s397_s25, 32 }
  0x66   : > { %p1895_p10 = scmp.ne.s32.totalorder %s397_s25, %s1894_s16  ;;  %p1902_p4 = scmp.lt.s32.totalorder %s397_s25, %s397_s25 }
  0x67   : > { %p1903_p7 = scmp.lt.s32.totalorder %s1901_s28, %s1894_s16 }
  0x68   : > { %p1897_p2 = pnand %p1895_p10, %p2149_p0 }
  0x69   : > { %p1904_p8 = por %p1903_p7, %p1902_p4 }
  0x6a   : > { %p1898_p3 = pneg %p1897_p2 }
  0x6c   : > { %p1905_p11 = pnand %p1904_p8, %p1898_p3 }
  0x6e   : > { %1908 = shalt.err (!%p1905_p11)
}
  0x6f   : > { %1697 = dma.hbm_to_vmem [thread:$0]  (!%p2133_p12), %s2462_s8, 16, %s397_s25, [#allocation13]  }
  0x70   : > { %p2490_p13 = scmp.ne.s32.totalorder %s2487_s20, 0 }
  0x71   : > { %p2491_p1 = scmp.eq.s32.totalorder (!%p2490_p13), %s2097_s29, 0 }
  0x72   : > { %428 = sbr.rel (%p2490_p13) target bundleno = 2429 (0x97d), region = 72 }
  0x79   : > { %1954 = dma.done.wait (%p2491_p1), [#allocation7], 16   ;;  %p2492_p0 = pmov %p2491_p1 }
  0x7b   : > { %1956 = vsyncadd (%p2492_p0), [#allocation7], 4294967280  ;;  %p2493_p6 = pmov %p2492_p0 }
  0x7c   : > { %p2494_p5 = pmov %p2492_p0 }
  0x7d   : > { %1958 = dma.done.wait (%p2493_p6), [#allocation10], 32  }
  0x7e   : > { %1960 = vsyncadd (%p2494_p5), [#allocation10], 4294967264  ;;  %p2495_p9 = pmov %p2492_p0 }
  0x7f   : > { %p2496_p12 = pmov %p2492_p0 }
  0x80   : > { %1962 = dma.done.wait (%p2495_p9), [#allocation13], 16  }
  0x81   : > { %1964 = vsyncadd (%p2496_p12), [#allocation13], 4294967280  ;;  %p483_p10 = scmp.lt.s32.totalorder %s2097_s29, 1  ;;  %vm491_vm0 = vcmask 261120   ;;  %v1763_v4 = vld [vmem:[%s2457_s3] sm:$0xff]   ;;  %v1989_v5 = vmov 0.0  }
  0x82   : > { %1583 = vmatprep.subr.bf16.mxu0 %v1989_v5  ;;  %vm1990_vm1 = vmmov 0   ;;  %v1764_v6 = vld [vmem:[%s2457_s3 + $0x8] sm:$0xff]   ;;  %1591 = vmatprep.subr.bf16.mxu1 %v1989_v5  ;;  %v1519_v17 = vld [vmem:[%s2455_s1] ss:$0 sm:$0xff]  ;;  %vm590_vm2 = vcmask 64512   ;;  %s1991_s17 = smov 120  }
  0x83   : > { %s484_s20 = scalar_select %p483_p10, %s2097_s29, 1  ;;  %1587 = vmatprep.mubr.msk.bf16.mxu0 %vm1990_vm1, %v1989_v5  ;;  %1584 = vmatpush3.bf16.msra.mxu0 %v1763_v4  ;;  %v1520_v19 = vld [vmem:[%s2456_s2] ss:$0 sm:$0xff]  ;;  %v1521_v23 = vld [vmem:[#allocation6] ss:$0 sm:$0xff]  ;;  %vm909_vm3 = vcmask 1043456  }
  0x84   : > { %1585 = vmatprep.subr.bf16.mxu0 %v1989_v5  ;;  %1593 = vmatprep.mubr.msk.bf16.mxu1 %vm1990_vm1, %v1989_v5  ;;  %s1992_s19 = smov 96   ;;  %s1995_s23 = smov 72   ;;  %vm1096_vm4 = vcmask 130112   ;;  %vm1102_vm5 = vcmask 195712   ;;  %vm1108_vm6 = vcmask 261312   ;;  %vm1345_vm8 = vcmask 523264  }
  0x85   : > { %s1518_s30 = sshll.u32 %s484_s20, 3  ;;  %s1993_s20 = smov 88  }
  0x86   : > { %s486_s21 = scalar_lea.vmem %s2454_s0, %s1518_s30  ;;  %s1994_s30 = smov 80  }
  0x87   : > { %v2250_v0 = vld [vmem:[%s486_s21] sm:$0xff]  ;;  %1586 = vmatpush3.bf16.msra.mxu0 %v1764_v6  ;;  %s1996_s25 = smov 112   ;;  %s1997_s21 = smov 104  }
  0x88   : > { %v492_v1 = vsel %vm491_vm0, %v2250_v0, 0.0  ;;  %v497_v2 = vmul.f32 %v2250_v0, %v2250_v0  ;;  %1597 = vmatprep.subr.bf16.mxu0 %v1989_v5  ;;  %s1998_s15 = smov 64   ;;  %s1999_s27 = smov 48  }
  0x89   : > { %493 = vadd.xlane.f32.xlu0 %v492_v1  ;;  %s2000_s14 = smov 40   ;;  %s2001_s22 = smov 56  }
  0x8a   : > { %v498_v3 = vsel %vm491_vm0, %v497_v2, 0.0  ;;  %s2002_s16 = smov 16   ;;  %s2497_s24 = sld [smem:[#allocation25_spill]] }
  0x8b   : > { %p2498_p3 = scmp.ne.s32.totalorder %s2484_s18, 0  ;;  %s2005_s28 = smov [#allocation14]  }
  0x8d   : > { %499 = vadd.xlane.f32.xlu0 %v498_v3 }
 0x116   : > { %v494_v7 = vpop.xlane.xlu0 %493 }
 0x117   : > { %v496_v8 = vmul.f32 0.03125, %v494_v7 }
 0x119   : > { %v502_v10 = vmul.f32 %v496_v8, %v496_v8  ;;  %v505_v15 = vsub.f32 %v2250_v0, %v496_v8 }
 0x11a   : > { %v500_v9 = vpop.xlane.xlu0 %499 }
 0x11b   : > { %v501_v11 = vmul.f32 0.03125, %v500_v9 }
 0x11d   : > { %v503_v12 = vsub.f32 %v501_v11, %v502_v10 }
 0x11f   : > { %v504_v13 = vmax.f32 %v503_v12, 0.0 }
 0x121   : > { %v506_v14 = vadd.f32 1e-05, %v504_v13 }
 0x123   : > { %1773 = vrsqrt.f32 %v506_v14 }
 0x12d   : > { %v1774_v16 = vpop.eup %1773 }
 0x12e   : > { %v508_v18 = vmul.f32 %v1774_v16, %v505_v15 }
 0x130   : > { %v515_v20 = vmul.f32 %v1519_v17, %v508_v18 }
 0x132   : > { %v522_v21 = vadd.f32 %v1520_v19, %v515_v20 }
 0x134   : > { %v523_v22 = vpack.c.bf16 %v522_v21, %v522_v21 }
 0x136   : > { %1588 = vmatmul.mubr.msk.bf16.vlgmr.msra.gmra.mrb[0].mxu0 %vm491_vm0, %v523_v22 }
 0x137   : > { %1599 = vmatprep.mubr.msk.bf16.mxu0 %vm1990_vm1, %v1989_v5 }
 0x209   : > { %v584_v24 = vpop.f32.mrb[0].mxu0 }
 0x20a   : > { %v2281_v25 = vadd.f32 %v1521_v23, %v584_v24  ;;  %v1589_v26 = vpop.f32.mrb[1].mxu0 }
 0x20b   : > { %v587_v27 = vpop.f32.mrb[2].mxu0 }
 0x20c   : > { %601 = vrot.lane.b32.xlu0 %v2281_v25, %s1991_s17  ;;  %593 = vrot.lane.b32.xlu1 %v2281_v25, %s1992_s19  ;;  %v1590_v28 = vpop.f32.mrb[3].mxu0  ;;  %591 = vst.msk [vmem:[#allocation2] sm:$0xff] %vm590_vm2, %v2281_v25  ;;  %s2003_s19 = smov 8   ;;  %s1913_s17 = sshll.u32 %s2005_s28, 4  ;;  %s1914_s17 = int_to_ptr.vmem [resolvable:$false] %s1913_s17 }
 0x210   : > { %606 = vrot.lane.b32.xlu1 %v2281_v25, %s1993_s20  ;;  %s2004_s20 = smov 24  }
 0x213   : > { %v646_v35 = vld [vmem:[#allocation2] sm:$0xff] }
 0x214   : > { %621 = vrot.lane.b32.xlu1 %v2281_v25, %s1994_s30  ;;  %v650_v40 = vmul.f32 0.35355338, %v646_v35 }
 0x216   : > { %v654_v45 = vpack.c.bf16 %v650_v40, %v650_v40 }
 0x218   : > { %636 = vrot.lane.b32.xlu1 %v2281_v25, %s1995_s23 }
 0x21c   : > { %616 = vrot.lane.b32.xlu1 %v2281_v25, %s1996_s25 }
 0x220   : > { %631 = vrot.lane.b32.xlu1 %v2281_v25, %s1997_s21  ;;  %s1550_s21 = sshll.u32 %s2097_s29, 7 }
 0x221   : > { %s2411_s13 = scalar_lea.hbm %s2497_s24, %s1550_s21 }
 0x27e   : > { %v602_v29 = vpop.permute.xlu0 %601  ;;  %v594_v30 = vpop.permute.xlu1 %593 }
 0x27f   : > { %605 = vst.msk [vmem:[#allocation2 + $0x8] sm:$0xff] %vm590_vm2, %v602_v29  ;;  %596 = vst.msk [vmem:[#allocation3] sm:$0xff] %vm590_vm2, %v594_v30 }
 0x282   : > { %v607_v31 = vpop.permute.xlu1 %606 }
 0x283   : > { %610 = vst.msk [vmem:[#allocation3 + $0x8] sm:$0xff] %vm590_vm2, %v607_v31 }
 0x286   : > { %v622_v32 = vpop.permute.xlu1 %621  ;;  %v658_v33 = vld [vmem:[#allocation3] sm:$0xff]  ;;  %v647_v41 = vld [vmem:[#allocation2 + $0x8] sm:$0xff] }
 0x287   : > { %625 = vst.msk [vmem:[#allocation3 + $0x10] sm:$0xff] %vm590_vm2, %v622_v32  ;;  %v662_v34 = vpack.c.bf16 %v658_v33, %v658_v33  ;;  %v651_v47 = vmul.f32 0.35355338, %v647_v41 }
 0x289   : > { %v678_v36 = vsel %vm590_vm2, %v662_v34, 0  ;;  %v655_v51 = vpack.c.bf16 %v651_v47, %v651_v47 }
 0x28a   : > { %1592 = vmatpush3.bf16.xpose.msra.mxu1 %v678_v36  ;;  %v637_v37 = vpop.permute.xlu1 %636  ;;  %v659_v38 = vld [vmem:[#allocation3 + $0x8] sm:$0xff] }
 0x28b   : > { %640 = vst.msk [vmem:[#allocation3 + $0x18] sm:$0xff] %vm590_vm2, %v637_v37  ;;  %v663_v39 = vpack.c.bf16 %v659_v38, %v659_v38  ;;  %1603 = vmatprep.subr.bf16.mxu1 %v1989_v5 }
 0x28d   : > { %v724_v42 = vsel %vm590_vm2, %v663_v39, 0 }
 0x28e   : > { %1598 = vmatpush3.bf16.xpose.msra.mxu0 %v724_v42  ;;  %v617_v43 = vpop.permute.xlu1 %616  ;;  %v660_v44 = vld [vmem:[#allocation3 + $0x10] sm:$0xff] }
 0x28f   : > { %620 = vst.msk [vmem:[#allocation2 + $0x10] sm:$0xff] %vm590_vm2, %v617_v43  ;;  %v664_v46 = vpack.c.bf16 %v660_v44, %v660_v44  ;;  %1609 = vmatprep.subr.bf16.mxu0 %v1989_v5 }
 0x291   : > { %1594 = vmatmul.mubr.msk.bf16.vlgmr.msra.gmra.mrb[0].mxu1 %vm590_vm2, %v654_v45  ;;  %v770_v48 = vsel %vm590_vm2, %v664_v46, 0 }
 0x292   : > { %v632_v49 = vpop.permute.xlu1 %631  ;;  %1604 = vmatpush3.bf16.xpose.msra.mxu1 %v770_v48  ;;  %v661_v50 = vld [vmem:[#allocation3 + $0x18] sm:$0xff]  ;;  %1605 = vmatprep.mubr.msk.bf16.mxu1 %vm1990_vm1, %v1989_v5 }
 0x293   : > { %635 = vst.msk [vmem:[#allocation2 + $0x18] sm:$0xff] %vm590_vm2, %v632_v49  ;;  %v665_v52 = vpack.c.bf16 %v661_v50, %v661_v50  ;;  %1615 = vmatprep.subr.bf16.mxu1 %v1989_v5 }
 0x295   : > { %1600 = vmatmul.mubr.msk.bf16.vlgmr.msra.gmra.mrb[4].mxu0 %vm590_vm2, %v655_v51  ;;  %v816_v53 = vsel %vm590_vm2, %v665_v52, 0 }
 0x296   : > { %1610 = vmatpush3.bf16.xpose.msra.mxu0 %v816_v53  ;;  %v648_v54 = vld [vmem:[#allocation2 + $0x10] sm:$0xff]  ;;  %1611 = vmatprep.mubr.msk.bf16.mxu0 %vm1990_vm1, %v1989_v5 }
 0x297   : > { %v652_v55 = vmul.f32 0.35355338, %v648_v54  ;;  %1621 = vmatprep.subr.bf16.mxu0 %v1989_v5 }
 0x299   : > { %v656_v56 = vpack.c.bf16 %v652_v55, %v652_v55 }
 0x29a   : > { %v649_v57 = vld [vmem:[#allocation2 + $0x18] sm:$0xff] }
 0x29b   : > { %1606 = vmatmul.mubr.msk.bf16.vlgmr.msra.gmra.mrb[4].mxu1 %vm590_vm2, %v656_v56  ;;  %v653_v58 = vmul.f32 0.35355338, %v649_v57 }
 0x29c   : > { %1617 = vmatprep.mubr.msk.bf16.mxu1 %vm1990_vm1, %v1989_v5 }
 0x29d   : > { %v657_v59 = vpack.c.bf16 %v653_v58, %v653_v58 }
 0x29f   : > { %1612 = vmatmul.mubr.msk.bf16.vlgmr.msra.gmra.mrb[8].mxu0 %vm590_vm2, %v657_v59 }
 0x2a0   : > { %1623 = vmatprep.mubr.msk.bf16.mxu0 %vm1990_vm1, %v1989_v5 }
 0x364   : > { %v714_v60 = vpop.f32.mrb[0].mxu1 }
 0x365   : > { %v1595_v61 = vpop.f32.mrb[1].mxu1  ;;  %v858_v62 = vsel %vm590_vm2, %v714_v60, -inf }
 0x366   : > { %859 = vmax.xlane.f32.xlu1 %v858_v62  ;;  %v717_v63 = vpop.f32.mrb[2].mxu1 }
 0x367   : > { %v1596_v1 = vpop.f32.mrb[3].mxu1 }
 0x368   : > { %v760_v2 = vpop.f32.mrb[4].mxu0 }
 0x369   : > { %v1601_v3 = vpop.f32.mrb[5].mxu0  ;;  %v861_v4 = vsel %vm590_vm2, %v760_v2, -inf }
 0x36a   : > { %862 = vmax.xlane.f32.xlu0 %v861_v4  ;;  %v763_v6 = vpop.f32.mrb[6].mxu0 }
 0x36b   : > { %v1602_v7 = vpop.f32.mrb[7].mxu0 }
 0x36e   : > { %v806_v8 = vpop.f32.mrb[4].mxu1 }
 0x36f   : > { %v1607_v9 = vpop.f32.mrb[5].mxu1  ;;  %v864_v10 = vsel %vm590_vm2, %v806_v8, -inf }
 0x370   : > { %865 = vmax.xlane.f32.xlu1 %v864_v10  ;;  %v809_v11 = vpop.f32.mrb[6].mxu1 }
 0x371   : > { %v1608_v12 = vpop.f32.mrb[7].mxu1 }
 0x372   : > { %v852_v13 = vpop.f32.mrb[8].mxu0 }
 0x373   : > { %v1613_v14 = vpop.f32.mrb[9].mxu0  ;;  %v867_v15 = vsel %vm590_vm2, %v852_v13, -inf }
 0x374   : > { %868 = vmax.xlane.f32.xlu0 %v867_v15  ;;  %v855_v16 = vpop.f32.mrb[10].mxu0 }
 0x375   : > { %v1614_v17 = vpop.f32.mrb[11].mxu0  ;;  %v1766_v16 = vld [vmem:[%s2459_s5 + $0x8] sm:$0xff]  }
 0x381   : > { %597 = vrot.lane.b32.xlu1 %v2281_v25, %s1998_s15 }
 0x3f3   : > { %v860_v18 = vpop.xlane.xlu1 %859 }
 0x3f4   : > { %v870_v19 = vsub.f32 %v714_v60, %v860_v18 }
 0x3f6   : > { %v874_v20 = vmul.f32 1.442695, %v870_v19 }
 0x3f7   : > { %v863_v21 = vpop.xlane.xlu0 %862 }
 0x3f8   : > { %1775 = vpow2.f32 %v874_v20  ;;  %v871_v22 = vsub.f32 %v760_v2, %v863_v21 }
 0x3fa   : > { %v876_v23 = vmul.f32 1.442695, %v871_v22 }
 0x3fc   : > { %1777 = vpow2.f32 %v876_v23 }
 0x3fd   : > { %v866_v24 = vpop.xlane.xlu1 %865 }
 0x3fe   : > { %v872_v26 = vsub.f32 %v806_v8, %v866_v24 }
 0x400   : > { %v878_v27 = vmul.f32 1.442695, %v872_v26 }
 0x401   : > { %v598_v28 = vpop.permute.xlu1 %597  ;;  %v869_v29 = vpop.xlane.xlu0 %868 }
 0x402   : > { %v1776_v30 = vpop.eup %1775  ;;  %1779 = vpow2.f32 %v878_v27  ;;  %600 = vst.msk [vmem:[#allocation4] sm:$0xff] %vm590_vm2, %v598_v28  ;;  %v873_v31 = vsub.f32 %v852_v13, %v869_v29  ;;  %v1765_v13 = vld [vmem:[%s2459_s5] sm:$0xff]  }
 0x403   : > { %v882_v32 = vsel %vm590_vm2, %v1776_v30, 0.0 }
 0x404   : > { %v880_v33 = vmul.f32 1.442695, %v873_v31  ;;  %883 = vadd.xlane.f32.xlu1 %v882_v32  ;;  %v1533_v32 = vld [vmem:[#allocation9] ss:$0 sm:$0xff] }
 0x406   : > { %v1778_v34 = vpop.eup %1777  ;;  %1781 = vpow2.f32 %v880_v33 }
 0x407   : > { %v885_v35 = vsel %vm590_vm2, %v1778_v34, 0.0 }
 0x408   : > { %886 = vadd.xlane.f32.xlu0 %v885_v35 }
 0x409   : > { %v666_v36 = vld [vmem:[#allocation4] sm:$0xff] }
 0x40a   : > { %v670_v37 = vpack.c.bf16 %v666_v36, %v666_v36 }
 0x40c   : > { %v1780_v38 = vpop.eup %1779  ;;  %v911_v39 = vsel %vm909_vm3, %v670_v37, 0 }
 0x40d   : > { %1616 = vmatpush3.bf16.msra.mxu1 %v911_v39  ;;  %v888_v40 = vsel %vm590_vm2, %v1780_v38, 0.0 }
 0x40e   : > { %889 = vadd.xlane.f32.xlu1 %v888_v40  ;;  %1627 = vmatprep.subr.bf16.mxu1 %v1989_v5 }
 0x410   : > { %v1782_v41 = vpop.eup %1781 }
 0x411   : > { %v891_v42 = vsel %vm590_vm2, %v1782_v41, 0.0 }
 0x412   : > { %892 = vadd.xlane.f32.xlu0 %v891_v42  ;;  %v1767_v42 = vld [vmem:[%s2463_s9] sm:$0xff]  }
 0x41f   : > { %626 = vrot.lane.b32.xlu1 %v2281_v25, %s1999_s27 }
 0x423   : > { %641 = vrot.lane.b32.xlu1 %v2281_v25, %s2000_s14 }
 0x428   : > { %611 = vrot.lane.b32.xlu0 %v2281_v25, %s2001_s22 }
 0x491   : > { %v884_v43 = vpop.xlane.xlu1 %883 }
 0x492   : > { %1783 = vrcp.f32 %v884_v43 }
 0x495   : > { %v887_v44 = vpop.xlane.xlu0 %886 }
 0x49b   : > { %v890_v45 = vpop.xlane.xlu1 %889 }
 0x49c   : > { %v1784_v46 = vpop.eup %1783  ;;  %1785 = vrcp.f32 %v890_v45 }
 0x49d   : > { %v898_v47 = vmul.f32 %v1784_v46, %v1776_v30  ;;  %1787 = vrcp.f32 %v887_v44 }
 0x49f   : > { %v627_v48 = vpop.permute.xlu1 %626  ;;  %v893_v49 = vpop.xlane.xlu0 %892  ;;  %v902_v50 = vpack.c.bf16 %v898_v47, %v898_v47 }
 0x4a0   : > { %630 = vst.msk [vmem:[#allocation4 + $0x10] sm:$0xff] %vm590_vm2, %v627_v48  ;;  %1789 = vrcp.f32 %v893_v49 }
 0x4a1   : > { %1618 = vmatmul.mubr.msk.bf16.vlgmr.msra.gmra.mrb[8].mxu1 %vm590_vm2, %v902_v50 }
 0x4a2   : > { %1629 = vmatprep.mubr.msk.bf16.mxu1 %vm1990_vm1, %v1989_v5 }
 0x4a3   : > { %v642_v51 = vpop.permute.xlu1 %641  ;;  %v612_v25 = vpop.permute.xlu0 %611 }
 0x4a4   : > { %645 = vst.msk [vmem:[#allocation4 + $0x18] sm:$0xff] %vm590_vm2, %v642_v51  ;;  %615 = vst.msk [vmem:[#allocation4 + $0x8] sm:$0xff] %vm590_vm2, %v612_v25 }
 0x4a6   : > { %v1786_v52 = vpop.eup %1785 }
 0x4a7   : > { %v668_v53 = vld [vmem:[#allocation4 + $0x10] sm:$0xff]  ;;  %v900_v54 = vmul.f32 %v1786_v52, %v1780_v38  ;;  %v1788_v56 = vpop.eup %1787  ;;  %v1537_v52 = vld [vmem:[#allocation11] ss:$0 sm:$0xff] }
 0x4a8   : > { %v672_v55 = vpack.c.bf16 %v668_v53, %v668_v53  ;;  %v899_v60 = vmul.f32 %v1788_v56, %v1778_v34 }
 0x4a9   : > { %v904_v61 = vpack.c.bf16 %v900_v54, %v900_v54  ;;  %v1538_v54 = vld [vmem:[#allocation12] ss:$0 sm:$0xff] }
 0x4aa   : > { %v1003_v57 = vsel %vm909_vm3, %v672_v55, 0  ;;  %v903_v2 = vpack.c.bf16 %v899_v60, %v899_v60  ;;  %v1790_v3 = vpop.eup %1789  ;;  %v1771_v60 = vld [vmem:[%s2465_s11 + $0x10] sm:$0xff]  }
 0x4ab   : > { %1628 = vmatpush3.bf16.msra.mxu1 %v1003_v57  ;;  %v667_v58 = vld [vmem:[#allocation4 + $0x8] sm:$0xff]  ;;  %v669_v59 = vld [vmem:[#allocation4 + $0x18] sm:$0xff]  ;;  %v901_v6 = vmul.f32 %v1790_v3, %v1782_v41 }
 0x4ac   : > { %v671_v62 = vpack.c.bf16 %v667_v58, %v667_v58  ;;  %1639 = vmatprep.subr.bf16.mxu1 %v1989_v5  ;;  %v673_v1 = vpack.c.bf16 %v669_v59, %v669_v59  ;;  %v1769_v58 = vld [vmem:[%s2465_s11] sm:$0xff]   ;;  %v1770_v59 = vld [vmem:[%s2465_s11 + $0x8] sm:$0xff]  }
 0x4ad   : > { %v905_v7 = vpack.c.bf16 %v901_v6, %v901_v6 }
 0x4ae   : > { %1630 = vmatmul.mubr.msk.bf16.vlgmr.msra.gmra.mrb[12].mxu1 %vm590_vm2, %v904_v61  ;;  %v957_v63 = vsel %vm909_vm3, %v671_v62, 0  ;;  %v1049_v4 = vsel %vm909_vm3, %v673_v1, 0  ;;  %v1772_v61 = vld [vmem:[%s2465_s11 + $0x18] sm:$0xff]   ;;  %v1539_v62 = vld [vmem:[%s2464_s10] ss:$0 sm:$0xff] }
 0x4af   : > { %1622 = vmatpush3.bf16.msra.mxu0 %v957_v63  ;;  %1643 = vmatprep.mubr.msk.bf16.mxu1 %vm1990_vm1, %v1989_v5 }
 0x4b0   : > { %1633 = vmatprep.subr.bf16.mxu0 %v1989_v5  ;;  %1640 = vmatpush3.bf16.msra.mxu1 %v1765_v13 }
 0x4b1   : > { %1641 = vmatprep.subr.bf16.mxu1 %v1989_v5 }
 0x4b2   : > { %1624 = vmatmul.mubr.msk.bf16.vlgmr.msra.gmra.mrb[12].mxu0 %vm590_vm2, %v903_v2 }
 0x4b3   : > { %1634 = vmatpush3.bf16.msra.mxu0 %v1049_v4  ;;  %1635 = vmatprep.mubr.msk.bf16.mxu0 %vm1990_vm1, %v1989_v5 }
 0x4b4   : > { %1647 = vmatprep.subr.bf16.mxu0 %v1989_v5  ;;  %1642 = vmatpush3.bf16.msra.mxu1 %v1766_v16 }
 0x4b5   : > { %1655 = vmatprep.subr.bf16.mxu1 %v1989_v5 }
 0x4ba   : > { %1636 = vmatmul.mubr.msk.bf16.vlgmr.msra.gmra.mrb[16].mxu0 %vm590_vm2, %v905_v7 }
 0x4bb   : > { %1651 = vmatprep.mubr.msk.bf16.mxu0 %vm1990_vm1, %v1989_v5  ;;  %1648 = vmatpush3.bf16.msra.mxu0 %v1767_v42 }
 0x4bc   : > { %1649 = vmatprep.subr.bf16.mxu0 %v1989_v5 }
 0x574   : > { %v947_v8 = vpop.f32.mrb[8].mxu1 }
 0x575   : > { %1091 = vst.msk [vmem:[#allocation5] sm:$0xff] %vm590_vm2, %v947_v8  ;;  %v1619_v9 = vpop.f32.mrb[9].mxu1 }
 0x576   : > { %v950_v10 = vpop.f32.mrb[10].mxu1 }
 0x577   : > { %v1620_v11 = vpop.f32.mrb[11].mxu1 }
 0x581   : > { %v1039_v12 = vpop.f32.mrb[12].mxu1 }
 0x582   : > { %1099 = vrot.lane.b32.xlu1 %v1039_v12, %s2002_s16  ;;  %v1631_v14 = vpop.f32.mrb[13].mxu1 }
 0x583   : > { %v1042_v15 = vpop.f32.mrb[14].mxu1 }
 0x584   : > { %v1632_v17 = vpop.f32.mrb[15].mxu1 }
 0x585   : > { %v993_v18 = vpop.f32.mrb[12].mxu0 }
 0x586   : > { %1093 = vrot.lane.b32.xlu0 %v993_v18, %s2003_s19  ;;  %v1625_v19 = vpop.f32.mrb[13].mxu0  ;;  %s1915_s19 = scalar_lea.vmem %s1914_s17, 256 }
 0x587   : > { %v996_v20 = vpop.f32.mrb[14].mxu0 }
 0x588   : > { %v1626_v21 = vpop.f32.mrb[15].mxu0 }
 0x58d   : > { %v1085_v22 = vpop.f32.mrb[16].mxu0 }
 0x58e   : > { %1105 = vrot.lane.b32.xlu0 %v1085_v22, %s2004_s20  ;;  %v1637_v23 = vpop.f32.mrb[17].mxu0  ;;  %s480_s20 = sand.u32 1, %s1975_s26  }
 0x58f   : > { %v1088_v24 = vpop.f32.mrb[18].mxu0  ;;  %s1517_s30 = sshll.u32 %s480_s20, 3  ;;  %s1392_s29 = scalar_lea.sflag [#allocation8], %s480_s20 }
 0x590   : > { %v1638_v26 = vpop.f32.mrb[19].mxu0  ;;  %s482_s15 = scalar_lea.vmem [#allocation14], %s1517_s30 }
 0x591   : > { %s1405_s27 = sshll.u32 %s482_s15, 4  ;;  %s2413_s27 = int_to_ptr.vmem [resolvable:$true] %s1405_s27 }
 0x592   : > { %s1909_s16 = scalar_lea.vmem %s2413_s27, 128  ;;  %p1916_p8 = scmp.lt.s32.totalorder %s2413_s27, %s1914_s17 }
 0x593   : > { %p1910_p2 = scmp.ne.s32.totalorder %s2413_s27, %s1909_s16  ;;  %p1917_p11 = scmp.lt.s32.totalorder %s1915_s19, %s1909_s16 }
 0x595   : > { %p1911_p4 = pnand %p1910_p2, %p2498_p3  ;;  %p1918_p13 = por %p1917_p11, %p1916_p8 }
 0x597   : > { %p1912_p7 = pneg %p1911_p4 }
 0x599   : > { %p1919_p1 = pnand %p1918_p13, %p1912_p7 }
 0x5f4   : > { %v1100_v28 = vpop.permute.xlu1 %1099 }
 0x5f8   : > { %v1094_v27 = vpop.permute.xlu0 %1093 }
 0x5f9   : > { %1097 = vst.msk [vmem:[#allocation5] sm:$0xff] %vm1096_vm4, %v1094_v27 }
 0x5fa   : > { %1103 = vst.msk [vmem:[#allocation5] sm:$0xff] %vm1102_vm5, %v1100_v28 }
 0x600   : > { %v1106_v29 = vpop.permute.xlu0 %1105 }
 0x601   : > { %1109 = vst.msk [vmem:[#allocation5] sm:$0xff] %vm1108_vm6, %v1106_v29 }
 0x608   : > { %v1110_v30 = vld [vmem:[#allocation5] sm:$0xff] }
 0x609   : > { %v1111_v31 = vpack.c.bf16 %v1110_v30, %v1110_v30 }
 0x60b   : > { %1644 = vmatmul.mubr.msk.bf16.vlgmr.msra.gmra.mrb[16].mxu1 %vm491_vm0, %v1111_v31 }
 0x60c   : > { %1663 = vmatprep.mubr.msk.bf16.mxu1 %vm1990_vm1, %v1989_v5  ;;  %1656 = vmatpush3.bf16.msra.mxu1 %v1769_v58 }
 0x60d   : > { %1657 = vmatprep.subr.bf16.mxu1 %v1989_v5 }
 0x610   : > { %1658 = vmatpush3.bf16.msra.mxu1 %v1770_v59 }
 0x611   : > { %1659 = vmatprep.subr.bf16.mxu1 %v1989_v5 }
 0x614   : > { %1660 = vmatpush3.bf16.msra.mxu1 %v1771_v60 }
 0x615   : > { %1661 = vmatprep.subr.bf16.mxu1 %v1989_v5 }
 0x618   : > { %1662 = vmatpush3.bf16.msra.mxu1 %v1772_v61 }
 0x6de   : > { %v1172_v33 = vpop.f32.mrb[16].mxu1 }
 0x6df   : > { %v1173_v34 = vadd.f32 %v1533_v32, %v1172_v33  ;;  %v1645_v35 = vpop.f32.mrb[17].mxu1  ;;  %v1543_v32 = vld [vmem:[%s2466_s12] ss:$0 sm:$0xff] }
 0x6e0   : > { %v1175_v36 = vpop.f32.mrb[18].mxu1 }
 0x6e1   : > { %v2368_v37 = vadd.f32 %v1173_v34, %v2250_v0  ;;  %v1646_v38 = vpop.f32.mrb[19].mxu1  ;;  %v1768_v0 = vld [vmem:[%s2463_s9 + $0x8] sm:$0xff]  }
 0x6e2   : > { %1650 = vmatpush3.bf16.msra.mxu0 %v1768_v0 }
 0x6e3   : > { %v1181_v39 = vsel %vm491_vm0, %v2368_v37, 0.0  ;;  %v1185_v40 = vmul.f32 %v2368_v37, %v2368_v37 }
 0x6e4   : > { %1182 = vadd.xlane.f32.xlu1 %v1181_v39 }
 0x6e5   : > { %v1186_v41 = vsel %vm491_vm0, %v1185_v40, 0.0 }
 0x6e6   : > { %1187 = vadd.xlane.f32.xlu0 %v1186_v41 }
 0x771   : > { %v1183_v43 = vpop.xlane.xlu1 %1182 }
 0x772   : > { %v1184_v44 = vmul.f32 0.03125, %v1183_v43 }
 0x773   : > { %v1188_v45 = vpop.xlane.xlu0 %1187 }
 0x774   : > { %v1190_v46 = vmul.f32 %v1184_v44, %v1184_v44  ;;  %v1189_v47 = vmul.f32 0.03125, %v1188_v45  ;;  %v1193_v51 = vsub.f32 %v2368_v37, %v1184_v44 }
 0x776   : > { %v1191_v48 = vsub.f32 %v1189_v47, %v1190_v46 }
 0x778   : > { %v1192_v49 = vmax.f32 %v1191_v48, 0.0 }
 0x77a   : > { %v1194_v50 = vadd.f32 1e-05, %v1192_v49 }
 0x77c   : > { %1791 = vrsqrt.f32 %v1194_v50 }
 0x786   : > { %v1792_v25 = vpop.eup %1791 }
 0x787   : > { %v1196_v53 = vmul.f32 %v1792_v25, %v1193_v51 }
 0x789   : > { %v1203_v55 = vmul.f32 %v1537_v52, %v1196_v53 }
 0x78b   : > { %v1210_v56 = vadd.f32 %v1538_v54, %v1203_v55 }
 0x78d   : > { %v1211_v57 = vpack.c.bf16 %v1210_v56, %v1210_v56 }
 0x78f   : > { %1652 = vmatmul.mubr.msk.bf16.vlgmr.msra.gmra.mrb[20].mxu0 %vm491_vm0, %v1211_v57 }
 0x862   : > { %v1272_v63 = vpop.f32.mrb[20].mxu0 }
 0x863   : > { %v1273_v1 = vadd.f32 %v1539_v62, %v1272_v63  ;;  %v1653_v2 = vpop.f32.mrb[21].mxu0 }
 0x864   : > { %v1275_v3 = vpop.f32.mrb[22].mxu0 }
 0x865   : > { %v1279_v4 = vmul.f32 0.70710677, %v1273_v1  ;;  %v1654_v6 = vpop.f32.mrb[23].mxu0  ;;  %v1278_v28 = vmul.f32 0.5, %v1273_v1 }
 0x867   : > { %v1280_v7 = vand.u32 2147483647, %v1279_v4  ;;  %vm1300_vm7 = vcmp.lt.f32.partialorder %v1279_v4, 0.0 }
 0x869   : > { %v1281_v8 = vmul.f32 0.3275911, %v1280_v7  ;;  %v1294_v5 = vsub.f32 0.0, %v1280_v7 }
 0x86b   : > { %v1282_v9 = vadd.f32 1.0, %v1281_v8  ;;  %v1295_v11 = vmul.f32 %v1294_v5, %v1280_v7 }
 0x86d   : > { %1793 = vrcp.f32 %v1282_v9  ;;  %v1296_v14 = vmul.f32 1.442695, %v1295_v11 }
 0x86f   : > { %1795 = vpow2.f32 %v1296_v14 }
 0x877   : > { %v1794_v10 = vpop.eup %1793 }
 0x878   : > { %v1285_v12 = vmul.f32 1.0614054, %v1794_v10 }
 0x879   : > { %v1796_v22 = vpop.eup %1795 }
 0x87a   : > { %v1286_v13 = vadd.f32 -1.4531521, %v1285_v12 }
 0x87c   : > { %v1287_v15 = vmul.f32 %v1794_v10, %v1286_v13 }
 0x87e   : > { %v1288_v16 = vadd.f32 1.4214138, %v1287_v15 }
 0x880   : > { %v1289_v17 = vmul.f32 %v1794_v10, %v1288_v16 }
 0x882   : > { %v1290_v18 = vadd.f32 -0.28449672, %v1289_v17 }
 0x884   : > { %v1291_v19 = vmul.f32 %v1794_v10, %v1290_v18 }
 0x886   : > { %v1292_v20 = vadd.f32 0.2548296, %v1291_v19 }
 0x888   : > { %v1293_v21 = vmul.f32 %v1794_v10, %v1292_v20 }
 0x88a   : > { %v1298_v23 = vmul.f32 %v1796_v22, %v1293_v21 }
 0x88c   : > { %v1299_v24 = vsub.f32 1.0, %v1298_v23 }
 0x88e   : > { %v1301_v26 = vsub.f32 0.0, %v1299_v24 }
 0x890   : > { %v1302_v27 = vsel %vm1300_vm7, %v1301_v26, %v1299_v24 }
 0x891   : > { %v1303_v29 = vadd.f32 1.0, %v1302_v27 }
 0x893   : > { %v1304_v30 = vmul.f32 %v1303_v29, %v1278_v28 }
 0x895   : > { %v1305_v31 = vpack.c.bf16 %v1304_v30, %v1304_v30 }
 0x897   : > { %1664 = vmatmul.mubr.msk.bf16.vlgmr.msra.gmra.mrb[20].mxu1 %vm1345_vm8, %v1305_v31 }
 0x96a   : > { %v1383_v33 = vpop.f32.mrb[20].mxu1 }
 0x96b   : > { %v1384_v34 = vadd.f32 %v1543_v32, %v1383_v33  ;;  %v1665_v35 = vpop.f32.mrb[21].mxu1 }
 0x96c   : > { %v1386_v36 = vpop.f32.mrb[22].mxu1 }
 0x96d   : > { %v1389_v38 = vadd.f32 %v1384_v34, %v2368_v37  ;;  %v1666_v39 = vpop.f32.mrb[23].mxu1 }
 0x96f   : > { %1390 = vst.msk [vmem:[%s482_s15] sm:$0xff] %vm491_vm0, %v1389_v38 }
 0x970   : > { %1922 = shalt.err (!%p1919_p1)
}
 0x971   : > { %s1923_s20 = scalar_lea.hbm %s2411_s13, 128  ;;  %s1927_s25 = scalar_lea.hbm %s2497_s24, 256 }
 0x972   : > { %p1924_p0 = scmp.ne.s32.totalorder %s2411_s13, %s1923_s20  ;;  %p1928_p9 = scmp.lt.u32.totalorder %s2411_s13, %s2497_s24 }
 0x973   : > { %p1929_p12 = scmp.lt.u32.totalorder %s1927_s25, %s1923_s20  ;;  %p1931_p2 = scmp.lt.u32.totalorder %s1923_s20, %s2411_s13 }
 0x974   : > { %p1925_p6 = pnand %p1924_p0, %p2498_p3 }
 0x975   : > { %p1930_p10 = por %p1929_p12, %p1928_p9 }
 0x976   : > { %p1926_p5 = pneg %p1925_p6 }
 0x977   : > { %p1932_p4 = por %p1931_p2, %p1930_p10 }
 0x979   : > { %p1933_p7 = pnand %p1932_p4, %p1926_p5 }
 0x97b   : > { %1936 = shalt.err (!%p1933_p7)
}
 0x97c   : > { %1683 = dma.vmem_to_hbm [thread:$0]  (%p2498_p3), %s2413_s27, 128, %s2411_s13, %s1392_s29  }
 0x97d PF: > { %s2499_s14 = sld [smem:[#allocation21_spill]]  ;;  %s2500_s22 = sld [smem:[#allocation19_spill]] }
 0x97e   : > { %s2501_s16 = sld [smem:[#allocation24_spill]] }
 0x983   : > { %p1710_p8 = scmp.ge.s32.totalorder %s2499_s14, 2  ;;  %s1417_s28 = sand.u32 1, %s2500_s22  }
 0x984   : > { %p2502_p11 = scmp.ne.s32.totalorder %s2501_s16, 0  ;;  %s1418_s17 = scalar_lea.sflag [#allocation8], %s1417_s28 }
 0x986   : > { %p1699_p13 = pnand %p1710_p8, %p2502_p11 }
 0x988   : > { %1966 = dma.done.wait (!%p1699_p13), %s1418_s17, 128  }
 0x989   : > { %1968 = vsyncadd (!%p1699_p13), %s1418_s17, 4294967168  ;;  %s2503_s28 = sld [smem:[#allocation22_spill]]  ;;  %s2504_s19 = sld [smem:[#allocation20_spill]] }
 0x98a   : > { %s2505_s27 = sld [smem:[#allocation23_spill]]  ;;  %s2506_s25 = smov %s1975_s26 }
 0x98f   : > { %p26_p1 = scmp.ge.s32.totalorder %s2503_s28, 4   ;;  %s2507_s26 = smov %s2504_s19 }
 0x991   :  { %28 = sbr.rel (!%p26_p1) target bundleno = 8 (0x8), region = 133 }
 0x998   :  { %1423 = vsyncpa [#allocation7], 1 }
 0x999   :  { %1425 = vsyncpa [#allocation7 + $0x1], 1 }
 0x99a   :  { %1426 = vsyncpa [#allocation10], 1 }
 0x99b   :  { %1427 = vsyncpa [#allocation13], 1 }
 0x99c   :  { %1428 = vsyncpa [#allocation8], 1 }
 0x99d   :  { %1430 = vsyncpa [#allocation8 + $0x1], 1 }

</bundles_post_ra>
